<compile_context>
chip_gen: v7x
topology: tpu7x:2x2x1
jax: 0.10.0
libtpu: 0.0.40
codegen_flags: <defaults>
</compile_context>

<pallas_src>
import functools
import math

import jax
import jax.numpy as jnp
from jax import lax
from jax.experimental import pallas as pl
from jax.experimental.pallas import tpu as pltpu


# ----------------------------- small helpers -----------------------------

@functools.lru_cache(maxsize=None)
def _vmem_limit_bytes():
    """Per-generation scoped-VMEM budget (v5e/v6e: 128 MiB physical, v7x: 64 MiB/TC)."""
    try:
        phys = int(pltpu.get_tpu_info().vmem_capacity_bytes)
    except Exception:  # pragma: no cover - backends/versions without the query
        phys = 128 * 1024 * 1024
    return max(32 * 1024 * 1024, min(3 * phys // 8, 64 * 1024 * 1024))


def _gelu(x):
    # TODO(synk): HF BERT uses erf-GELU; the tanh approximation is numerically close and
    #             guaranteed to lower on all Mosaic generations.
    return 0.5 * x * (1.0 + jnp.tanh(0.7978845608028654 * (x + 0.044715 * x * x * x)))


def _layernorm_f32(y, g, b, eps):
    mean = jnp.mean(y, axis=-1, keepdims=True)
    yc = y - mean
    var = jnp.mean(yc * yc, axis=-1, keepdims=True)
    return yc * lax.rsqrt(var + eps) * g + b


# ----------------------------- Pallas kernels -----------------------------

def _attention_block_kernel(x_ref, mask_ref, wqkv_ref, bqkv_ref, wo_ref, bo_ref,
                            g_ref, beta_ref, o_ref, ctx_ref,
                            *, num_heads, scale, ln_eps):
    """One batch row: fused QKV proj + multi-head attention + o-proj + residual + LN1."""
    S, H = x_ref.shape[1], x_ref.shape[2]
    Dh = H // num_heads

    x = x_ref[0]                                                   # (S, H) bf16 residual

    # 1) fused [Wq|Wk|Wv] projection: single whole-K MXU pass, f32 accumulate.
    qkv = jnp.dot(x, wqkv_ref[...], preferred_element_type=jnp.float32)
    qkv = (qkv + bqkv_ref[...].astype(jnp.float32)).astype(jnp.bfloat16)   # (S, 3H)

    bias = mask_ref[0].astype(jnp.float32)                         # (1, S): 0 keep / -1e9 pad

    # 2) multi-head attention; each head's context is streamed into a lane-offset
    #    slice of the VMEM scratch (no concatenate, no growing ctx live-set).
    for h in range(num_heads):                                     # static unroll
        q_h = qkv[:, h * Dh:(h + 1) * Dh]
        k_h = qkv[:, H + h * Dh:H + (h + 1) * Dh]
        v_h = qkv[:, 2 * H + h * Dh:2 * H + (h + 1) * Dh]
        # contract both operands on Dh -> no explicit K transpose materialization
        s = lax.dot_general(q_h, k_h, (((1,), (1,)), ((), ())),
                            preferred_element_type=jnp.float32) * scale     # (S, S)
        s = s + bias                                               # additive key mask
        s = s - jnp.max(s, axis=-1, keepdims=True)
        p = jnp.exp(s)
        p = p * pl.reciprocal(jnp.sum(p, axis=-1, keepdims=True), approx=True)
        ctx_ref[:, h * Dh:(h + 1) * Dh] = jnp.dot(
            p.astype(jnp.bfloat16), v_h, preferred_element_type=jnp.float32)

    # 3) output projection + bias + residual + LayerNorm (statistics in f32).
    ctx = ctx_ref[...].astype(jnp.bfloat16)                        # (S, H)
    y = jnp.dot(ctx, wo_ref[...], preferred_element_type=jnp.float32)
    y = y + bo_ref[...].astype(jnp.float32) + x.astype(jnp.float32)
    y = _layernorm_f32(y, g_ref[...].astype(jnp.float32),
                       beta_ref[...].astype(jnp.float32), ln_eps)
    o_ref[0] = y.astype(o_ref.dtype)


def _ffn_block_kernel(x_ref, w1_ref, b1_ref, w2_ref, b2_ref, g_ref, beta_ref, o_ref,
                      *, ln_eps):
    """One batch row: FFN-up + GELU + FFN-down + residual + LN2, all whole-K matmuls."""
    x = x_ref[0]                                                   # (S, H) bf16 residual
    h = jnp.dot(x, w1_ref[...], preferred_element_type=jnp.float32)
    h = _gelu(h + b1_ref[...].astype(jnp.float32)).astype(jnp.bfloat16)     # (S, I)
    y = jnp.dot(h, w2_ref[...], preferred_element_type=jnp.float32)
    y = y + b2_ref[...].astype(jnp.float32) + x.astype(jnp.float32)
    y = _layernorm_f32(y, g_ref[...].astype(jnp.float32),
                       beta_ref[...].astype(jnp.float32), ln_eps)
    o_ref[0] = y.astype(o_ref.dtype)


def _layernorm_kernel(x_ref, g_ref, b_ref, o_ref, *, eps):
    y = _layernorm_f32(x_ref[...].astype(jnp.float32),
                       g_ref[...].astype(jnp.float32),
                       b_ref[...].astype(jnp.float32), eps)
    o_ref[...] = y.astype(o_ref.dtype)


# ----------------------------- kernel wrappers -----------------------------

def attention_block(x, mask_bias, lp, *, num_heads, ln_eps=1e-12):
    B, S, H = x.shape
    H3 = lp["wqkv"].shape[1]
    assert H3 == 3 * H and H % num_heads == 0
    scale = 1.0 / math.sqrt(H // num_heads)
    return pl.pallas_call(
        functools.partial(_attention_block_kernel, num_heads=num_heads,
                          scale=scale, ln_eps=ln_eps),
        out_shape=jax.ShapeDtypeStruct((B, S, H), x.dtype),
        grid=(B,),                                        # >= 2 parallel steps (v7x: 2 cores)
        in_specs=[
            pl.BlockSpec((1, S, H), lambda b: (b, 0, 0)),   # residual stream row (bf16)
            pl.BlockSpec((1, 1, S), lambda b: (b, 0, 0)),   # additive key-mask bias
            pl.BlockSpec((H, H3), lambda b: (0, 0)),        # fused [Wq|Wk|Wv]  (whole, contiguous)
            pl.BlockSpec((1, H3), lambda b: (0, 0)),
            pl.BlockSpec((H, H), lambda b: (0, 0)),         # Wo
            pl.BlockSpec((1, H), lambda b: (0, 0)),
            pl.BlockSpec((1, H), lambda b: (0, 0)),          # LN1 gamma
            pl.BlockSpec((1, H), lambda b: (0, 0)),          # LN1 beta
        ],
        out_specs=pl.BlockSpec((1, S, H), lambda b: (b, 0, 0)),
        scratch_shapes=[pltpu.VMEM((S, H), jnp.float32)],    # per-head ctx streaming buffer
        compiler_params=pltpu.CompilerParams(
            dimension_semantics=("parallel",),
            vmem_limit_bytes=_vmem_limit_bytes(),
        ),
    )(x, mask_bias,
      lp["wqkv"], lp["bqkv"].reshape(1, H3),
      lp["wo"], lp["bo"].reshape(1, H),
      lp["ln1_g"].reshape(1, H), lp["ln1_b"].reshape(1, H))


def ffn_block(x, lp, *, ln_eps=1e-12):
    B, S, H = x.shape
    I = lp["w1"].shape[1]
    return pl.pallas_call(
        functools.partial(_ffn_block_kernel, ln_eps=ln_eps),
        out_shape=jax.ShapeDtypeStruct((B, S, H), x.dtype),
        grid=(B,),
        in_specs=[
            pl.BlockSpec((1, S, H), lambda b: (b, 0, 0)),    # residual stream row (bf16)
            pl.BlockSpec((H, I), lambda b: (0, 0)),          # W1 (whole, contiguous)
            pl.BlockSpec((1, I), lambda b: (0, 0)),
            pl.BlockSpec((I, H), lambda b: (0, 0)),          # W2 (whole, contiguous)
            pl.BlockSpec((1, H), lambda b: (0, 0)),
            pl.BlockSpec((1, H), lambda b: (0, 0)),          # LN2 gamma
            pl.BlockSpec((1, H), lambda b: (0, 0)),          # LN2 beta
        ],
        out_specs=pl.BlockSpec((1, S, H), lambda b: (b, 0, 0)),
        compiler_params=pltpu.CompilerParams(
            dimension_semantics=("parallel",),
            vmem_limit_bytes=_vmem_limit_bytes(),
        ),
    )(x, lp["w1"], lp["b1"].reshape(1, I), lp["w2"], lp["b2"].reshape(1, H),
      lp["ln2_g"].reshape(1, H), lp["ln2_b"].reshape(1, H))


def layernorm(x, g, b, *, eps=1e-12, out_dtype=None):
    M, H = x.shape
    out_dtype = out_dtype if out_dtype is not None else x.dtype
    tm = M // 2 if (M % 16 == 0 and M >= 16) else M       # >= 2 parallel steps when possible
    return pl.pallas_call(
        functools.partial(_layernorm_kernel, eps=eps),
        out_shape=jax.ShapeDtypeStruct((M, H), out_dtype),
        grid=(M // tm,),
        in_specs=[
            pl.BlockSpec((tm, H), lambda i: (i, 0)),
            pl.BlockSpec((1, H), lambda i: (0, 0)),
            pl.BlockSpec((1, H), lambda i: (0, 0)),
        ],
        out_specs=pl.BlockSpec((tm, H), lambda i: (i, 0)),
        compiler_params=pltpu.CompilerParams(dimension_semantics=("parallel",)),
    )(x, g.reshape(1, H), b.reshape(1, H))


# ----------------------------- BERT forward (glue) -----------------------------

@functools.partial(jax.jit, static_argnames=("num_heads",))
def bert_encoder_forward(input_ids, attention_mask, params, *, num_heads):
    token_type_ids = jnp.zeros_like(input_ids)
    # TODO(synk): embedding gathers stay in XLA (jnp.take); tiny tables, not worth a DMA-gather kernel.
    we = jnp.take(params["word_emb"], input_ids, axis=0)          # (B, S, H)
    pe = params["pos_emb"][None, :input_ids.shape[1], :]          # (1, S, H)
    te = jnp.take(params["type_emb"], token_type_ids, axis=0)     # (B, S, H)
    emb = we + pe + te
    B, S, H = emb.shape

    # bf16 residual stream in HBM; LN / softmax statistics stay f32 inside kernels.
    x = layernorm(emb.reshape(B * S, H), params["emb_ln_g"], params["emb_ln_b"],
                  out_dtype=jnp.bfloat16).reshape(B, S, H)

    # additive key-mask bias precomputed once per forward (0 keep, -1e9 pad), f32
    mask_bias = ((attention_mask.astype(jnp.float32) - 1.0) * 1e9).reshape(B, 1, S)

    for lp in params["layers"]:
        x = attention_block(x, mask_bias, lp, num_heads=num_heads)   # kernel A
        x = ffn_block(x, lp)                                         # kernel B

    # forward() of the PyTorch module returns last_hidden_state[:, 0, :]  ([CLS] token)
    return x[:, 0, :].astype(jnp.float32)


# ----------------------------- deterministic init & tokenization -----------------------------

def init_params(key, *, vocab_size, max_pos, type_vocab, hidden, inter, num_layers):
    std = 0.02
    state = {"k": key}

    def nxt():
        state["k"], sub = jax.random.split(state["k"])
        return sub

    def rnd(shape, dtype=jnp.float32):
        return (jax.random.normal(nxt(), shape, jnp.float32) * std).astype(dtype)

    wdt = jnp.bfloat16   # matmul weights stored bf16 (MXU-native, halves weight DMA traffic)
    p = {
        "word_emb": rnd((vocab_size, hidden)),
        "pos_emb": rnd((max_pos, hidden)),
        "type_emb": rnd((type_vocab, hidden)),
        "emb_ln_g": jnp.ones((hidden,), jnp.float32),
        "emb_ln_b": jnp.zeros((hidden,), jnp.float32),
        "layers": [],
    }
    for _ in range(num_layers):
        lp = {
            "wqkv": rnd((hidden, 3 * hidden), wdt),          # [Wq | Wk | Wv], head-major inside each
            "bqkv": jnp.zeros((3 * hidden,), jnp.float32),
            "wo": rnd((hidden, hidden), wdt), "bo": jnp.zeros((hidden,), jnp.float32),
            "ln1_g": jnp.ones((hidden,), jnp.float32), "ln1_b": jnp.zeros((hidden,), jnp.float32),
            "w1": rnd((hidden, inter), wdt), "b1": jnp.zeros((inter,), jnp.float32),
            "w2": rnd((inter, hidden), wdt), "b2": jnp.zeros((hidden,), jnp.float32),
            "ln2_g": jnp.ones((hidden,), jnp.float32), "ln2_b": jnp.zeros((hidden,), jnp.float32),
        }
        p["layers"].append(lp)
    return p


def synthetic_tokenize(key, batch_size, max_length, vocab_size, lengths):
    # Emulates tokenizer(text, padding='max_length', max_length=32, truncation=True)
    ids = jax.random.randint(key, (batch_size, max_length), 5, vocab_size, dtype=jnp.int32)
    ids = ids.at[:, 0].set(1)  # [CLS]-like token
    pos = jnp.arange(max_length, dtype=jnp.int32)[None, :]
    mask = (pos < jnp.asarray(lengths, jnp.int32)[:, None]).astype(jnp.int32)
    ids = ids * mask           # pad token id 0
    return ids, mask


# ----------------------------- main -----------------------------

if __name__ == "__main__":
    # Small synthetic BERT config (bert-large itself: hidden=1024, 24 layers, 16 heads)
    B = 2
    MAX_LEN = 32          # module's self.max_length
    VOCAB = 512
    HIDDEN = 128
    NUM_HEADS = 2
    INTER = 4 * HIDDEN
    NUM_LAYERS = 2

    root = jax.random.PRNGKey(0)
    k_tok, k_par = jax.random.split(root)

    params = init_params(
        k_par, vocab_size=VOCAB, max_pos=MAX_LEN, type_vocab=2,
        hidden=HIDDEN, inter=INTER, num_layers=NUM_LAYERS,
    )
    input_ids, attention_mask = synthetic_tokenize(
        k_tok, batch_size=B, max_length=MAX_LEN, vocab_size=VOCAB, lengths=[10, 23],
    )

    text_out = bert_encoder_forward(input_ids, attention_mask, params, num_heads=NUM_HEADS)
    text_out = jax.block_until_ready(text_out)

    assert text_out.shape == (B, HIDDEN), text_out.shape
    assert text_out.dtype == jnp.float32
    assert bool(jnp.all(jnp.isfinite(text_out)))
    print("KERNEL_OK")
</pallas_src>

<mosaic_0001>
module attributes {stable_mosaic.version = 11 : i64} {
  func.func @_layernorm_kernel(%arg0: i32, %arg1: memref<32x128xf32, #tpu.memory_space<vmem>>, %arg2: memref<1x128xf32, #tpu.memory_space<vmem>>, %arg3: memref<1x128xf32, #tpu.memory_space<vmem>>, %arg4: memref<32x128xbf16, #tpu.memory_space<vmem>>) attributes {dimension_semantics = [#tpu.dimension_semantics<parallel>], iteration_bounds = array<i64: 2>, scalar_prefetch = 0 : i64, scratch_operands = 0 : i64, tpu.core_type = #tpu.core_type<tc>, window_params = [{transform_indices = @transform_0, window_bounds = array<i64: 32, 128>}, {pipeline_mode = #tpu.pipeline_mode<synchronous>, transform_indices = @transform_1, window_bounds = array<i64: 1, 128>}, {pipeline_mode = #tpu.pipeline_mode<synchronous>, transform_indices = @transform_2, window_bounds = array<i64: 1, 128>}, {transform_indices = @transform_3, window_bounds = array<i64: 32, 128>}]} {
    %c0 = arith.constant 0 : index
    %c0_0 = arith.constant 0 : index
    %0 = vector.load %arg1[%c0, %c0_0] : memref<32x128xf32, #tpu.memory_space<vmem>>, vector<32x128xf32>
    %c0_1 = arith.constant 0 : index
    %c0_2 = arith.constant 0 : index
    %1 = vector.load %arg2[%c0_1, %c0_2] : memref<1x128xf32, #tpu.memory_space<vmem>>, vector<1x128xf32>
    %c0_3 = arith.constant 0 : index
    %c0_4 = arith.constant 0 : index
    %2 = vector.load %arg3[%c0_3, %c0_4] : memref<1x128xf32, #tpu.memory_space<vmem>>, vector<1x128xf32>
    %cst = arith.constant dense<0.000000e+00> : vector<32xf32>
    %3 = vector.multi_reduction <add>, %0, %cst [1] : vector<32x128xf32> to vector<32xf32>
    %4 = vector.shape_cast %3 : vector<32xf32> to vector<32x1xf32>
    %cst_5 = arith.constant 1.280000e+02 : f32
    %5 = vector.broadcast %cst_5 : f32 to vector<32x1xf32>
    %6 = arith.divf %4, %5 : vector<32x1xf32>
    %7 = vector.broadcast %6 : vector<32x1xf32> to vector<32x128xf32>
    %8 = arith.subf %0, %7 : vector<32x128xf32>
    %9 = arith.mulf %8, %8 : vector<32x128xf32>
    %cst_6 = arith.constant dense<0.000000e+00> : vector<32xf32>
    %10 = vector.multi_reduction <add>, %9, %cst_6 [1] : vector<32x128xf32> to vector<32xf32>
    %11 = vector.shape_cast %10 : vector<32xf32> to vector<32x1xf32>
    %cst_7 = arith.constant 1.280000e+02 : f32
    %12 = vector.broadcast %cst_7 : f32 to vector<32x1xf32>
    %13 = arith.divf %11, %12 : vector<32x1xf32>
    %cst_8 = arith.constant 9.99999996E-13 : f32
    %14 = vector.broadcast %cst_8 : f32 to vector<32x1xf32>
    %15 = arith.addf %13, %14 : vector<32x1xf32>
    %16 = math.rsqrt %15 : vector<32x1xf32>
    %17 = vector.broadcast %16 : vector<32x1xf32> to vector<32x128xf32>
    %18 = arith.mulf %8, %17 : vector<32x128xf32>
    %19 = vector.broadcast %1 : vector<1x128xf32> to vector<32x128xf32>
    %20 = arith.mulf %18, %19 : vector<32x128xf32>
    %21 = vector.broadcast %2 : vector<1x128xf32> to vector<32x128xf32>
    %22 = arith.addf %20, %21 : vector<32x128xf32>
    %23 = arith.truncf %22 : vector<32x128xf32> to vector<32x128xbf16>
    %c0_9 = arith.constant 0 : index
    %c0_10 = arith.constant 0 : index
    %24 = vector.load %arg4[%c0_9, %c0_10] : memref<32x128xbf16, #tpu.memory_space<vmem>>, vector<32x128xbf16>
    tpu.vector_store %arg4[%c0_9, %c0_10], %23 {strides = array<i32>} : memref<32x128xbf16, #tpu.memory_space<vmem>>, vector<32x128xbf16>,
    return
  }
  func.func @transform_0(%arg0: i32) -> (i32, i32) {
    %c0_i32 = arith.constant 0 : i32
    %c0_i32_0 = arith.constant 0 : i32
    return %arg0, %c0_i32 : i32, i32
  }
  func.func @transform_1(%arg0: i32) -> (i32, i32) {
    %c0_i32 = arith.constant 0 : i32
    %c0_i32_0 = arith.constant 0 : i32
    %c0_i32_1 = arith.constant 0 : i32
    return %c0_i32, %c0_i32_0 : i32, i32
  }
  func.func @transform_2(%arg0: i32) -> (i32, i32) {
    %c0_i32 = arith.constant 0 : i32
    %c0_i32_0 = arith.constant 0 : i32
    %c0_i32_1 = arith.constant 0 : i32
    return %c0_i32, %c0_i32_0 : i32, i32
  }
  func.func @transform_3(%arg0: i32) -> (i32, i32) {
    %c0_i32 = arith.constant 0 : i32
    %c0_i32_0 = arith.constant 0 : i32
    return %arg0, %c0_i32 : i32, i32
  }
}

module attributes {stable_mosaic.version = 11 : i64} {
  func.func @_ffn_block_kernel(%arg0: i32, %arg1: memref<1x32x128xbf16, #tpu.memory_space<vmem>>, %arg2: memref<128x512xbf16, #tpu.memory_space<vmem>>, %arg3: memref<1x512xf32, #tpu.memory_space<vmem>>, %arg4: memref<512x128xbf16, #tpu.memory_space<vmem>>, %arg5: memref<1x128xf32, #tpu.memory_space<vmem>>, %arg6: memref<1x128xf32, #tpu.memory_space<vmem>>, %arg7: memref<1x128xf32, #tpu.memory_space<vmem>>, %arg8: memref<1x32x128xbf16, #tpu.memory_space<vmem>>) attributes {dimension_semantics = [#tpu.dimension_semantics<parallel>], iteration_bounds = array<i64: 2>, scalar_prefetch = 0 : i64, scratch_operands = 0 : i64, tpu.core_type = #tpu.core_type<tc>, window_params = [{transform_indices = @transform_0, window_bounds = array<i64: 1, 32, 128>}, {pipeline_mode = #tpu.pipeline_mode<synchronous>, transform_indices = @transform_1, window_bounds = array<i64: 128, 512>}, {pipeline_mode = #tpu.pipeline_mode<synchronous>, transform_indices = @transform_2, window_bounds = array<i64: 1, 512>}, {pipeline_mode = #tpu.pipeline_mode<synchronous>, transform_indices = @transform_3, window_bounds = array<i64: 512, 128>}, {pipeline_mode = #tpu.pipeline_mode<synchronous>, transform_indices = @transform_4, window_bounds = array<i64: 1, 128>}, {pipeline_mode = #tpu.pipeline_mode<synchronous>, transform_indices = @transform_5, window_bounds = array<i64: 1, 128>}, {pipeline_mode = #tpu.pipeline_mode<synchronous>, transform_indices = @transform_6, window_bounds = array<i64: 1, 128>}, {transform_indices = @transform_7, window_bounds = array<i64: 1, 32, 128>}]} {
    %c0 = arith.constant 0 : index
    %c0_0 = arith.constant 0 : index
    %c0_1 = arith.constant 0 : index
    %0 = vector.load %arg1[%c0, %c0_0, %c0_1] : memref<1x32x128xbf16, #tpu.memory_space<vmem>>, vector<1x32x128xbf16>
    %1 = vector.shape_cast %0 : vector<1x32x128xbf16> to vector<32x128xbf16>
    %c0_2 = arith.constant 0 : index
    %c0_3 = arith.constant 0 : index
    %2 = vector.load %arg2[%c0_2, %c0_3] : memref<128x512xbf16, #tpu.memory_space<vmem>>, vector<128x512xbf16>
    %cst = arith.constant dense<0.000000e+00> : vector<32x512xf32>
    %3 = tpu.matmul %1, %2, %cst {dimension_numbers = #tpu.dot_dimension_numbers<[1], [0], [0], [1], [0, 0, 1, 1], [], []>} : vector<32x128xbf16>, vector<128x512xbf16>, vector<32x512xf32> -> vector<32x512xf32>
    %c0_4 = arith.constant 0 : index
    %c0_5 = arith.constant 0 : index
    %4 = vector.load %arg3[%c0_4, %c0_5] : memref<1x512xf32, #tpu.memory_space<vmem>>, vector<1x512xf32>
    %5 = vector.broadcast %4 : vector<1x512xf32> to vector<32x512xf32>
    %6 = arith.addf %3, %5 : vector<32x512xf32>
    %cst_6 = arith.constant 5.000000e-01 : f32
    %7 = vector.broadcast %cst_6 : f32 to vector<32x512xf32>
    %8 = arith.mulf %7, %6 : vector<32x512xf32>
    %cst_7 = arith.constant 4.471500e-02 : f32
    %9 = vector.broadcast %cst_7 : f32 to vector<32x512xf32>
    %10 = arith.mulf %9, %6 : vector<32x512xf32>
    %11 = arith.mulf %10, %6 : vector<32x512xf32>
    %12 = arith.mulf %11, %6 : vector<32x512xf32>
    %13 = arith.addf %6, %12 : vector<32x512xf32>
    %cst_8 = arith.constant 0.797884583 : f32
    %14 = vector.broadcast %cst_8 : f32 to vector<32x512xf32>
    %15 = arith.mulf %14, %13 : vector<32x512xf32>
    %16 = math.tanh %15 : vector<32x512xf32>
    %cst_9 = arith.constant 1.000000e+00 : f32
    %17 = vector.broadcast %cst_9 : f32 to vector<32x512xf32>
    %18 = arith.addf %17, %16 : vector<32x512xf32>
    %19 = arith.mulf %8, %18 : vector<32x512xf32>
    %20 = arith.truncf %19 : vector<32x512xf32> to vector<32x512xbf16>
    %c0_10 = arith.constant 0 : index
    %c0_11 = arith.constant 0 : index
    %21 = vector.load %arg4[%c0_10, %c0_11] : memref<512x128xbf16, #tpu.memory_space<vmem>>, vector<512x128xbf16>
    %cst_12 = arith.constant dense<0.000000e+00> : vector<32x128xf32>
    %22 = tpu.matmul %20, %21, %cst_12 {dimension_numbers = #tpu.dot_dimension_numbers<[1], [0], [0], [1], [0, 0, 1, 1], [], []>} : vector<32x512xbf16>, vector<512x128xbf16>, vector<32x128xf32> -> vector<32x128xf32>
    %c0_13 = arith.constant 0 : index
    %c0_14 = arith.constant 0 : index
    %23 = vector.load %arg5[%c0_13, %c0_14] : memref<1x128xf32, #tpu.memory_space<vmem>>, vector<1x128xf32>
    %24 = vector.broadcast %23 : vector<1x128xf32> to vector<32x128xf32>
    %25 = arith.addf %22, %24 : vector<32x128xf32>
    %26 = arith.extf %1 : vector<32x128xbf16> to vector<32x128xf32>
    %27 = arith.addf %25, %26 : vector<32x128xf32>
    %c0_15 = arith.constant 0 : index
    %c0_16 = arith.constant 0 : index
    %28 = vector.load %arg6[%c0_15, %c0_16] : memref<1x128xf32, #tpu.memory_space<vmem>>, vector<1x128xf32>
    %c0_17 = arith.constant 0 : index
    %c0_18 = arith.constant 0 : index
    %29 = vector.load %arg7[%c0_17, %c0_18] : memref<1x128xf32, #tpu.memory_space<vmem>>, vector<1x128xf32>
    %cst_19 = arith.constant dense<0.000000e+00> : vector<32xf32>
    %30 = vector.multi_reduction <add>, %27, %cst_19 [1] : vector<32x128xf32> to vector<32xf32>
    %31 = vector.shape_cast %30 : vector<32xf32> to vector<32x1xf32>
    %cst_20 = arith.constant 1.280000e+02 : f32
    %32 = vector.broadcast %cst_20 : f32 to vector<32x1xf32>
    %33 = arith.divf %31, %32 : vector<32x1xf32>
    %34 = vector.broadcast %33 : vector<32x1xf32> to vector<32x128xf32>
    %35 = arith.subf %27, %34 : vector<32x128xf32>
    %36 = arith.mulf %35, %35 : vector<32x128xf32>
    %cst_21 = arith.constant dense<0.000000e+00> : vector<32xf32>
    %37 = vector.multi_reduction <add>, %36, %cst_21 [1] : vector<32x128xf32> to vector<32xf32>
    %38 = vector.shape_cast %37 : vector<32xf32> to vector<32x1xf32>
    %cst_22 = arith.constant 1.280000e+02 : f32
    %39 = vector.broadcast %cst_22 : f32 to vector<32x1xf32>
    %40 = arith.divf %38, %39 : vector<32x1xf32>
    %cst_23 = arith.constant 9.99999996E-13 : f32
    %41 = vector.broadcast %cst_23 : f32 to vector<32x1xf32>
    %42 = arith.addf %40, %41 : vector<32x1xf32>
    %43 = math.rsqrt %42 : vector<32x1xf32>
    %44 = vector.broadcast %43 : vector<32x1xf32> to vector<32x128xf32>
    %45 = arith.mulf %35, %44 : vector<32x128xf32>
    %46 = vector.broadcast %28 : vector<1x128xf32> to vector<32x128xf32>
    %47 = arith.mulf %45, %46 : vector<32x128xf32>
    %48 = vector.broadcast %29 : vector<1x128xf32> to vector<32x128xf32>
    %49 = arith.addf %47, %48 : vector<32x128xf32>
    %50 = arith.truncf %49 : vector<32x128xf32> to vector<32x128xbf16>
    %c0_24 = arith.constant 0 : index
    %c0_25 = arith.constant 0 : index
    %c0_26 = arith.constant 0 : index
    %51 = vector.load %arg8[%c0_24, %c0_25, %c0_26] : memref<1x32x128xbf16, #tpu.memory_space<vmem>>, vector<1x32x128xbf16>
    %52 = vector.shape_cast %51 : vector<1x32x128xbf16> to vector<32x128xbf16>
    %53 = vector.shape_cast %50 : vector<32x128xbf16> to vector<1x32x128xbf16>
    tpu.vector_store %arg8[%c0_24, %c0_25, %c0_26], %53 {strides = array<i32>} : memref<1x32x128xbf16, #tpu.memory_space<vmem>>, vector<1x32x128xbf16>,
    return
  }
  func.func @transform_0(%arg0: i32) -> (i32, i32, i32) {
    %c0_i32 = arith.constant 0 : i32
    %c0_i32_0 = arith.constant 0 : i32
    %c0_i32_1 = arith.constant 0 : i32
    return %arg0, %c0_i32, %c0_i32_0 : i32, i32, i32
  }
  func.func @transform_1(%arg0: i32) -> (i32, i32) {
    %c0_i32 = arith.constant 0 : i32
    %c0_i32_0 = arith.constant 0 : i32
    %c0_i32_1 = arith.constant 0 : i32
    return %c0_i32, %c0_i32_0 : i32, i32
  }
  func.func @transform_2(%arg0: i32) -> (i32, i32) {
    %c0_i32 = arith.constant 0 : i32
    %c0_i32_0 = arith.constant 0 : i32
    %c0_i32_1 = arith.constant 0 : i32
    return %c0_i32, %c0_i32_0 : i32, i32
  }
  func.func @transform_3(%arg0: i32) -> (i32, i32) {
    %c0_i32 = arith.constant 0 : i32
    %c0_i32_0 = arith.constant 0 : i32
    %c0_i32_1 = arith.constant 0 : i32
    return %c0_i32, %c0_i32_0 : i32, i32
  }
  func.func @transform_4(%arg0: i32) -> (i32, i32) {
    %c0_i32 = arith.constant 0 : i32
    %c0_i32_0 = arith.constant 0 : i32
    %c0_i32_1 = arith.constant 0 : i32
    return %c0_i32, %c0_i32_0 : i32, i32
  }
  func.func @transform_5(%arg0: i32) -> (i32, i32) {
    %c0_i32 = arith.constant 0 : i32
    %c0_i32_0 = arith.constant 0 : i32
    %c0_i32_1 = arith.constant 0 : i32
    return %c0_i32, %c0_i32_0 : i32, i32
  }
  func.func @transform_6(%arg0: i32) -> (i32, i32) {
    %c0_i32 = arith.constant 0 : i32
    %c0_i32_0 = arith.constant 0 : i32
    %c0_i32_1 = arith.constant 0 : i32
    return %c0_i32, %c0_i32_0 : i32, i32
  }
  func.func @transform_7(%arg0: i32) -> (i32, i32, i32) {
    %c0_i32 = arith.constant 0 : i32
    %c0_i32_0 = arith.constant 0 : i32
    %c0_i32_1 = arith.constant 0 : i32
    return %arg0, %c0_i32, %c0_i32_0 : i32, i32, i32
  }
}

module attributes {stable_mosaic.version = 11 : i64} {
  func.func @_attention_block_kernel(%arg0: i32, %arg1: memref<1x32x128xbf16, #tpu.memory_space<vmem>>, %arg2: memref<1x1x32xf32, #tpu.memory_space<vmem>>, %arg3: memref<128x384xbf16, #tpu.memory_space<vmem>>, %arg4: memref<1x384xf32, #tpu.memory_space<vmem>>, %arg5: memref<128x128xbf16, #tpu.memory_space<vmem>>, %arg6: memref<1x128xf32, #tpu.memory_space<vmem>>, %arg7: memref<1x128xf32, #tpu.memory_space<vmem>>, %arg8: memref<1x128xf32, #tpu.memory_space<vmem>>, %arg9: memref<1x32x128xbf16, #tpu.memory_space<vmem>>, %arg10: memref<32x128xf32, #tpu.memory_space<vmem>>) attributes {dimension_semantics = [#tpu.dimension_semantics<parallel>], iteration_bounds = array<i64: 2>, scalar_prefetch = 0 : i64, scratch_operands = 1 : i64, tpu.core_type = #tpu.core_type<tc>, window_params = [{transform_indices = @transform_0, window_bounds = array<i64: 1, 32, 128>}, {transform_indices = @transform_1, window_bounds = array<i64: 1, 1, 32>}, {pipeline_mode = #tpu.pipeline_mode<synchronous>, transform_indices = @transform_2, window_bounds = array<i64: 128, 384>}, {pipeline_mode = #tpu.pipeline_mode<synchronous>, transform_indices = @transform_3, window_bounds = array<i64: 1, 384>}, {pipeline_mode = #tpu.pipeline_mode<synchronous>, transform_indices = @transform_4, window_bounds = array<i64: 128, 128>}, {pipeline_mode = #tpu.pipeline_mode<synchronous>, transform_indices = @transform_5, window_bounds = array<i64: 1, 128>}, {pipeline_mode = #tpu.pipeline_mode<synchronous>, transform_indices = @transform_6, window_bounds = array<i64: 1, 128>}, {pipeline_mode = #tpu.pipeline_mode<synchronous>, transform_indices = @transform_7, window_bounds = array<i64: 1, 128>}, {transform_indices = @transform_8, window_bounds = array<i64: 1, 32, 128>}]} {
    %c0 = arith.constant 0 : index
    %c0_0 = arith.constant 0 : index
    %c0_1 = arith.constant 0 : index
    %0 = vector.load %arg1[%c0, %c0_0, %c0_1] : memref<1x32x128xbf16, #tpu.memory_space<vmem>>, vector<1x32x128xbf16>
    %1 = vector.shape_cast %0 : vector<1x32x128xbf16> to vector<32x128xbf16>
    %c0_2 = arith.constant 0 : index
    %c0_3 = arith.constant 0 : index
    %2 = vector.load %arg3[%c0_2, %c0_3] : memref<128x384xbf16, #tpu.memory_space<vmem>>, vector<128x384xbf16>
    %cst = arith.constant dense<0.000000e+00> : vector<32x384xf32>
    %3 = tpu.matmul %1, %2, %cst {dimension_numbers = #tpu.dot_dimension_numbers<[1], [0], [0], [1], [0, 0, 1, 1], [], []>} : vector<32x128xbf16>, vector<128x384xbf16>, vector<32x384xf32> -> vector<32x384xf32>
    %c0_4 = arith.constant 0 : index
    %c0_5 = arith.constant 0 : index
    %4 = vector.load %arg4[%c0_4, %c0_5] : memref<1x384xf32, #tpu.memory_space<vmem>>, vector<1x384xf32>
    %5 = vector.broadcast %4 : vector<1x384xf32> to vector<32x384xf32>
    %6 = arith.addf %3, %5 : vector<32x384xf32>
    %7 = arith.truncf %6 : vector<32x384xf32> to vector<32x384xbf16>
    %c0_6 = arith.constant 0 : index
    %c0_7 = arith.constant 0 : index
    %c0_8 = arith.constant 0 : index
    %8 = vector.load %arg2[%c0_6, %c0_7, %c0_8] : memref<1x1x32xf32, #tpu.memory_space<vmem>>, vector<1x1x32xf32>
    %9 = vector.shape_cast %8 : vector<1x1x32xf32> to vector<1x32xf32>
    %10 = vector.extract_strided_slice %7 {offsets = [0, 0], sizes = [32, 64], strides = [1, 1]} : vector<32x384xbf16> to vector<32x64xbf16>
    %11 = vector.extract_strided_slice %7 {offsets = [0, 128], sizes = [32, 64], strides = [1, 1]} : vector<32x384xbf16> to vector<32x64xbf16>
    %12 = vector.extract_strided_slice %7 {offsets = [0, 256], sizes = [32, 64], strides = [1, 1]} : vector<32x384xbf16> to vector<32x64xbf16>
    %cst_9 = arith.constant dense<0.000000e+00> : vector<32x32xf32>
    %13 = tpu.matmul %10, %11, %cst_9 {dimension_numbers = #tpu.dot_dimension_numbers<[1], [1], [0], [0], [0, 0, 1, 0], [], []>} : vector<32x64xbf16>, vector<32x64xbf16>, vector<32x32xf32> -> vector<32x32xf32>
    %cst_10 = arith.constant 1.250000e-01 : f32
    %14 = vector.broadcast %cst_10 : f32 to vector<32x32xf32>
    %15 = arith.mulf %13, %14 : vector<32x32xf32>
    %16 = vector.broadcast %9 : vector<1x32xf32> to vector<32x32xf32>
    %17 = arith.addf %15, %16 : vector<32x32xf32>
    %cst_11 = arith.constant dense<0xFF800000> : vector<32xf32>
    %18 = vector.multi_reduction <maximumf>, %17, %cst_11 [1] : vector<32x32xf32> to vector<32xf32>
    %19 = vector.shape_cast %18 : vector<32xf32> to vector<32x1xf32>
    %20 = vector.broadcast %19 : vector<32x1xf32> to vector<32x32xf32>
    %21 = arith.subf %17, %20 : vector<32x32xf32>
    %22 = math.exp %21 : vector<32x32xf32>
    %cst_12 = arith.constant dense<0.000000e+00> : vector<32xf32>
    %23 = vector.multi_reduction <add>, %22, %cst_12 [1] : vector<32x32xf32> to vector<32xf32>
    %24 = vector.shape_cast %23 : vector<32xf32> to vector<32x1xf32>
    %25 = tpu.reciprocal %24 {approx = true} : vector<32x1xf32> -> vector<32x1xf32>
    %26 = vector.broadcast %25 : vector<32x1xf32> to vector<32x32xf32>
    %27 = arith.mulf %22, %26 : vector<32x32xf32>
    %28 = arith.truncf %27 : vector<32x32xf32> to vector<32x32xbf16>
    %cst_13 = arith.constant dense<0.000000e+00> : vector<32x64xf32>
    %29 = tpu.matmul %28, %12, %cst_13 {dimension_numbers = #tpu.dot_dimension_numbers<[1], [0], [0], [1], [0, 0, 1, 1], [], []>} : vector<32x32xbf16>, vector<32x64xbf16>, vector<32x64xf32> -> vector<32x64xf32>
    %c0_14 = arith.constant 0 : index
    %c0_15 = arith.constant 0 : index
    %30 = vector.load %arg10[%c0_14, %c0_15] : memref<32x128xf32, #tpu.memory_space<vmem>>, vector<32x64xf32>
    tpu.vector_store %arg10[%c0_14, %c0_15], %29 {strides = array<i32>} : memref<32x128xf32, #tpu.memory_space<vmem>>, vector<32x64xf32>,
    %31 = vector.extract_strided_slice %7 {offsets = [0, 64], sizes = [32, 64], strides = [1, 1]} : vector<32x384xbf16> to vector<32x64xbf16>
    %32 = vector.extract_strided_slice %7 {offsets = [0, 192], sizes = [32, 64], strides = [1, 1]} : vector<32x384xbf16> to vector<32x64xbf16>
    %33 = vector.extract_strided_slice %7 {offsets = [0, 320], sizes = [32, 64], strides = [1, 1]} : vector<32x384xbf16> to vector<32x64xbf16>
    %cst_16 = arith.constant dense<0.000000e+00> : vector<32x32xf32>
    %34 = tpu.matmul %31, %32, %cst_16 {dimension_numbers = #tpu.dot_dimension_numbers<[1], [1], [0], [0], [0, 0, 1, 0], [], []>} : vector<32x64xbf16>, vector<32x64xbf16>, vector<32x32xf32> -> vector<32x32xf32>
    %cst_17 = arith.constant 1.250000e-01 : f32
    %35 = vector.broadcast %cst_17 : f32 to vector<32x32xf32>
    %36 = arith.mulf %34, %35 : vector<32x32xf32>
    %37 = vector.broadcast %9 : vector<1x32xf32> to vector<32x32xf32>
    %38 = arith.addf %36, %37 : vector<32x32xf32>
    %cst_18 = arith.constant dense<0xFF800000> : vector<32xf32>
    %39 = vector.multi_reduction <maximumf>, %38, %cst_18 [1] : vector<32x32xf32> to vector<32xf32>
    %40 = vector.shape_cast %39 : vector<32xf32> to vector<32x1xf32>
    %41 = vector.broadcast %40 : vector<32x1xf32> to vector<32x32xf32>
    %42 = arith.subf %38, %41 : vector<32x32xf32>
    %43 = math.exp %42 : vector<32x32xf32>
    %cst_19 = arith.constant dense<0.000000e+00> : vector<32xf32>
    %44 = vector.multi_reduction <add>, %43, %cst_19 [1] : vector<32x32xf32> to vector<32xf32>
    %45 = vector.shape_cast %44 : vector<32xf32> to vector<32x1xf32>
    %46 = tpu.reciprocal %45 {approx = true} : vector<32x1xf32> -> vector<32x1xf32>
    %47 = vector.broadcast %46 : vector<32x1xf32> to vector<32x32xf32>
    %48 = arith.mulf %43, %47 : vector<32x32xf32>
    %49 = arith.truncf %48 : vector<32x32xf32> to vector<32x32xbf16>
    %cst_20 = arith.constant dense<0.000000e+00> : vector<32x64xf32>
    %50 = tpu.matmul %49, %33, %cst_20 {dimension_numbers = #tpu.dot_dimension_numbers<[1], [0], [0], [1], [0, 0, 1, 1], [], []>} : vector<32x32xbf16>, vector<32x64xbf16>, vector<32x64xf32> -> vector<32x64xf32>
    %c0_21 = arith.constant 0 : index
    %c64 = arith.constant 64 : index
    %51 = vector.load %arg10[%c0_21, %c64] : memref<32x128xf32, #tpu.memory_space<vmem>>, vector<32x64xf32>
    tpu.vector_store %arg10[%c0_21, %c64], %50 {strides = array<i32>} : memref<32x128xf32, #tpu.memory_space<vmem>>, vector<32x64xf32>,
    %c0_22 = arith.constant 0 : index
    %c0_23 = arith.constant 0 : index
    %52 = vector.load %arg10[%c0_22, %c0_23] : memref<32x128xf32, #tpu.memory_space<vmem>>, vector<32x128xf32>
    %53 = arith.truncf %52 : vector<32x128xf32> to vector<32x128xbf16>
    %c0_24 = arith.constant 0 : index
    %c0_25 = arith.constant 0 : index
    %54 = vector.load %arg5[%c0_24, %c0_25] : memref<128x128xbf16, #tpu.memory_space<vmem>>, vector<128x128xbf16>
    %cst_26 = arith.constant dense<0.000000e+00> : vector<32x128xf32>
    %55 = tpu.matmul %53, %54, %cst_26 {dimension_numbers = #tpu.dot_dimension_numbers<[1], [0], [0], [1], [0, 0, 1, 1], [], []>} : vector<32x128xbf16>, vector<128x128xbf16>, vector<32x128xf32> -> vector<32x128xf32>
    %c0_27 = arith.constant 0 : index
    %c0_28 = arith.constant 0 : index
    %56 = vector.load %arg6[%c0_27, %c0_28] : memref<1x128xf32, #tpu.memory_space<vmem>>, vector<1x128xf32>
    %57 = vector.broadcast %56 : vector<1x128xf32> to vector<32x128xf32>
    %58 = arith.addf %55, %57 : vector<32x128xf32>
    %59 = arith.extf %1 : vector<32x128xbf16> to vector<32x128xf32>
    %60 = arith.addf %58, %59 : vector<32x128xf32>
    %c0_29 = arith.constant 0 : index
    %c0_30 = arith.constant 0 : index
    %61 = vector.load %arg7[%c0_29, %c0_30] : memref<1x128xf32, #tpu.memory_space<vmem>>, vector<1x128xf32>
    %c0_31 = arith.constant 0 : index
    %c0_32 = arith.constant 0 : index
    %62 = vector.load %arg8[%c0_31, %c0_32] : memref<1x128xf32, #tpu.memory_space<vmem>>, vector<1x128xf32>
    %cst_33 = arith.constant dense<0.000000e+00> : vector<32xf32>
    %63 = vector.multi_reduction <add>, %60, %cst_33 [1] : vector<32x128xf32> to vector<32xf32>
    %64 = vector.shape_cast %63 : vector<32xf32> to vector<32x1xf32>
    %cst_34 = arith.constant 1.280000e+02 : f32
    %65 = vector.broadcast %cst_34 : f32 to vector<32x1xf32>
    %66 = arith.divf %64, %65 : vector<32x1xf32>
    %67 = vector.broadcast %66 : vector<32x1xf32> to vector<32x128xf32>
    %68 = arith.subf %60, %67 : vector<32x128xf32>
    %69 = arith.mulf %68, %68 : vector<32x128xf32>
    %cst_35 = arith.constant dense<0.000000e+00> : vector<32xf32>
    %70 = vector.multi_reduction <add>, %69, %cst_35 [1] : vector<32x128xf32> to vector<32xf32>
    %71 = vector.shape_cast %70 : vector<32xf32> to vector<32x1xf32>
    %cst_36 = arith.constant 1.280000e+02 : f32
    %72 = vector.broadcast %cst_36 : f32 to vector<32x1xf32>
    %73 = arith.divf %71, %72 : vector<32x1xf32>
    %cst_37 = arith.constant 9.99999996E-13 : f32
    %74 = vector.broadcast %cst_37 : f32 to vector<32x1xf32>
    %75 = arith.addf %73, %74 : vector<32x1xf32>
    %76 = math.rsqrt %75 : vector<32x1xf32>
    %77 = vector.broadcast %76 : vector<32x1xf32> to vector<32x128xf32>
    %78 = arith.mulf %68, %77 : vector<32x128xf32>
    %79 = vector.broadcast %61 : vector<1x128xf32> to vector<32x128xf32>
    %80 = arith.mulf %78, %79 : vector<32x128xf32>
    %81 = vector.broadcast %62 : vector<1x128xf32> to vector<32x128xf32>
    %82 = arith.addf %80, %81 : vector<32x128xf32>
    %83 = arith.truncf %82 : vector<32x128xf32> to vector<32x128xbf16>
    %c0_38 = arith.constant 0 : index
    %c0_39 = arith.constant 0 : index
    %c0_40 = arith.constant 0 : index
    %84 = vector.load %arg9[%c0_38, %c0_39, %c0_40] : memref<1x32x128xbf16, #tpu.memory_space<vmem>>, vector<1x32x128xbf16>
    %85 = vector.shape_cast %84 : vector<1x32x128xbf16> to vector<32x128xbf16>
    %86 = vector.shape_cast %83 : vector<32x128xbf16> to vector<1x32x128xbf16>
    tpu.vector_store %arg9[%c0_38, %c0_39, %c0_40], %86 {strides = array<i32>} : memref<1x32x128xbf16, #tpu.memory_space<vmem>>, vector<1x32x128xbf16>,
    return
  }
  func.func @transform_0(%arg0: i32) -> (i32, i32, i32) {
    %c0_i32 = arith.constant 0 : i32
    %c0_i32_0 = arith.constant 0 : i32
    %c0_i32_1 = arith.constant 0 : i32
    return %arg0, %c0_i32, %c0_i32_0 : i32, i32, i32
  }
  func.func @transform_1(%arg0: i32) -> (i32, i32, i32) {
    %c0_i32 = arith.constant 0 : i32
    %c0_i32_0 = arith.constant 0 : i32
    %c0_i32_1 = arith.constant 0 : i32
    return %arg0, %c0_i32, %c0_i32_0 : i32, i32, i32
  }
  func.func @transform_2(%arg0: i32) -> (i32, i32) {
    %c0_i32 = arith.constant 0 : i32
    %c0_i32_0 = arith.constant 0 : i32
    %c0_i32_1 = arith.constant 0 : i32
    return %c0_i32, %c0_i32_0 : i32, i32
  }
  func.func @transform_3(%arg0: i32) -> (i32, i32) {
    %c0_i32 = arith.constant 0 : i32
    %c0_i32_0 = arith.constant 0 : i32
    %c0_i32_1 = arith.constant 0 : i32
    return %c0_i32, %c0_i32_0 : i32, i32
  }
  func.func @transform_4(%arg0: i32) -> (i32, i32) {
    %c0_i32 = arith.constant 0 : i32
    %c0_i32_0 = arith.constant 0 : i32
    %c0_i32_1 = arith.constant 0 : i32
    return %c0_i32, %c0_i32_0 : i32, i32
  }
  func.func @transform_5(%arg0: i32) -> (i32, i32) {
    %c0_i32 = arith.constant 0 : i32
    %c0_i32_0 = arith.constant 0 : i32
    %c0_i32_1 = arith.constant 0 : i32
    return %c0_i32, %c0_i32_0 : i32, i32
  }
  func.func @transform_6(%arg0: i32) -> (i32, i32) {
    %c0_i32 = arith.constant 0 : i32
    %c0_i32_0 = arith.constant 0 : i32
    %c0_i32_1 = arith.constant 0 : i32
    return %c0_i32, %c0_i32_0 : i32, i32
  }
  func.func @transform_7(%arg0: i32) -> (i32, i32) {
    %c0_i32 = arith.constant 0 : i32
    %c0_i32_0 = arith.constant 0 : i32
    %c0_i32_1 = arith.constant 0 : i32
    return %c0_i32, %c0_i32_0 : i32, i32
  }
  func.func @transform_8(%arg0: i32) -> (i32, i32, i32) {
    %c0_i32 = arith.constant 0 : i32
    %c0_i32_0 = arith.constant 0 : i32
    %c0_i32_1 = arith.constant 0 : i32
    return %arg0, %c0_i32, %c0_i32_0 : i32, i32, i32
  }
}

</mosaic_0001>

<bundles_post_ra>
// kernel: bert_encoder_forward.5
= control target key start
LH: loop header
LB: loop body
LE: loop exit
PB: predicated region body
PF: predicated region fallthrough
CT: control target
= control target key end

     0   :  { %s397_s12 = smov 0   ;;  %s424_s0 = inlined_call_operand.vmem [shape: f32[64,128], index: 0, kind: input, shape index: {}]   ;;  %s425_s1 = inlined_call_operand.vmem [shape: f32[1,128], index: 1, kind: input, shape index: {}]   ;;  %s426_s2 = inlined_call_operand.vmem [shape: f32[1,128], index: 2, kind: input, shape index: {}]   ;;  %s427_s3 = inlined_call_operand.vmem [shape: bf16[64,128], index: 3, kind: output, shape index: {}]  }
   0x1 LB: > { %s321_s13 = sadd.s32 4294967295, %s375_s12   ;;  %p325_p0 = scmp.ge.s32.totalorder %s375_s12, 1  ;;  %s375_s12 = sphi %s397_s12, %s13_s12  }
   0x2   : > { %p138_p1 = scmp.lt.s32.totalorder %s375_s12, 3 }
   0x4   : > { %p139_p2 = pnand %p325_p0, %p138_p1 }
   0x5   : > { %s326_s14 = sshll.u32 (!%p139_p2), %s321_s13, 2  ;;  %v330_v34 = vld [vmem:[%s425_s1] ss:$0 sm:$0xff] (!%p139_p2) }
   0x6   : > { %142 = sbr.rel (%p139_p2) target bundleno = 339 (0x153), region = 32  ;;  %p163_p3 = scmp.lt.s32.totalorder (!%p139_p2), %s326_s14, 7  ;;  %v331_v39 = vld [vmem:[%s426_s2] ss:$0 sm:$0xff] (!%p139_p2) }
   0xd   : > { %s429_s14 = smov (!%p163_p3, %s326_s14), 7 }
   0xe   : > { %s327_s15 = sshll.u32 %s429_s14, 3  ;;  %s329_s23 = sshll.u32 %s429_s14, 2 }
   0xf   : > { %s166_s18 = scalar_lea.vmem %s424_s0, %s327_s15  ;;  %s172_s26 = scalar_lea.vmem %s427_s3, %s329_s23 }
  0x10   : > { %v174_v0 = vld [vmem:[%s166_s18] sm:$0xff]  ;;  %v176_v1 = vld [vmem:[%s166_s18 + $0x10] sm:$0xff]  ;;  %v175_v2 = vld [vmem:[%s166_s18 + $0x8] sm:$0xff] }
  0x11   : > { %180 = vadd.xlane.f32.xlu0 %v174_v0  ;;  %184 = vadd.xlane.f32.xlu1 %v176_v1  ;;  %v177_v3 = vld [vmem:[%s166_s18 + $0x18] sm:$0xff] }
  0x15   : > { %182 = vadd.xlane.f32.xlu0 %v175_v2  ;;  %186 = vadd.xlane.f32.xlu1 %v177_v3 }
  0x9e   : > { %v181_v4 = vpop.xlane.xlu0 %180  ;;  %v185_v5 = vpop.xlane.xlu1 %184 }
  0x9f   : > { %v189_v6 = vmul.f32 0.0078125, %v181_v4  ;;  %v191_v7 = vmul.f32 0.0078125, %v185_v5 }
  0xa1   : > { %v193_v8 = vsub.f32 %v174_v0, %v189_v6  ;;  %v195_v9 = vsub.f32 %v176_v1, %v191_v7 }
  0xa2   : > { %v183_v10 = vpop.xlane.xlu0 %182  ;;  %v187_v11 = vpop.xlane.xlu1 %186 }
  0xa3   : > { %v190_v12 = vmul.f32 0.0078125, %v183_v10  ;;  %v197_v13 = vmul.f32 %v193_v8, %v193_v8  ;;  %v192_v14 = vmul.f32 0.0078125, %v187_v11  ;;  %v199_v17 = vmul.f32 %v195_v9, %v195_v9 }
  0xa5   : > { %v194_v15 = vsub.f32 %v175_v2, %v190_v12  ;;  %201 = vadd.xlane.f32.xlu0 %v197_v13  ;;  %v196_v16 = vsub.f32 %v177_v3, %v192_v14 }
  0xa7   : > { %v198_v18 = vmul.f32 %v194_v15, %v194_v15  ;;  %v200_v19 = vmul.f32 %v196_v16, %v196_v16 }
  0xa9   : > { %205 = vadd.xlane.f32.xlu0 %v199_v17  ;;  %203 = vadd.xlane.f32.xlu1 %v198_v18 }
  0xad   : > { %207 = vadd.xlane.f32.xlu1 %v200_v19 }
 0x132   : > { %v202_v20 = vpop.xlane.xlu0 %201 }
 0x133   : > { %v209_v21 = vmul.f32 0.0078125, %v202_v20 }
 0x135   : > { %v213_v22 = vadd.f32 1e-12, %v209_v21 }
 0x136   : > { %v204_v23 = vpop.xlane.xlu1 %203  ;;  %v206_v24 = vpop.xlane.xlu0 %205 }
 0x137   : > { %361 = vrsqrt.f32 %v213_v22  ;;  %v210_v25 = vmul.f32 0.0078125, %v204_v23  ;;  %v211_v26 = vmul.f32 0.0078125, %v206_v24 }
 0x139   : > { %v214_v27 = vadd.f32 1e-12, %v210_v25  ;;  %v215_v28 = vadd.f32 1e-12, %v211_v26 }
 0x13a   : > { %v208_v29 = vpop.xlane.xlu1 %207 }
 0x13b   : > { %363 = vrsqrt.f32 %v214_v27  ;;  %v212_v30 = vmul.f32 0.0078125, %v208_v29 }
 0x13c   : > { %365 = vrsqrt.f32 %v215_v28 }
 0x13d   : > { %v216_v31 = vadd.f32 1e-12, %v212_v30 }
 0x13f   : > { %367 = vrsqrt.f32 %v216_v31 }
 0x141   : > { %v362_v32 = vpop.eup %361 }
 0x142   : > { %v221_v33 = vmul.f32 %v362_v32, %v193_v8 }
 0x144   : > { %v231_v37 = vmul.f32 %v330_v34, %v221_v33 }
 0x145   : > { %v364_v35 = vpop.eup %363 }
 0x146   : > { %v366_v36 = vpop.eup %365  ;;  %v222_v38 = vmul.f32 %v364_v35, %v194_v15  ;;  %v241_v43 = vadd.f32 %v331_v39, %v231_v37 }
 0x147   : > { %v223_v40 = vmul.f32 %v366_v36, %v195_v9 }
 0x148   : > { %v232_v41 = vmul.f32 %v330_v34, %v222_v38 }
 0x149   : > { %v368_v42 = vpop.eup %367  ;;  %v233_v45 = vmul.f32 %v330_v34, %v223_v40 }
 0x14a   : > { %v242_v44 = vadd.f32 %v331_v39, %v232_v41  ;;  %v224_v46 = vmul.f32 %v368_v42, %v196_v16 }
 0x14b   : > { %v243_v49 = vadd.f32 %v331_v39, %v233_v45 }
 0x14c   : > { %v345_v47 = vpack.c.bf16 %v242_v44, %v241_v43  ;;  %v234_v48 = vmul.f32 %v330_v34, %v224_v46 }
 0x14e   : > { %346 = vst [vmem:[%s172_s26] sm:$0xff] %v345_v47   ;;  %v244_v50 = vadd.f32 %v331_v39, %v234_v48 }
 0x150   : > { %v350_v51 = vpack.c.bf16 %v244_v50, %v243_v49 }
 0x152   : > { %352 = vst [vmem:[%s172_s26 + $0x8] sm:$0xff] %v350_v51  }
 0x153 PF: > { %s13_s12 = sadd.s32 1, %s375_s12  }
 0x154   : > { %p10_p4 = scmp.ge.s32.totalorder %s13_s12, 4  }
 0x156   :  { %12 = sbr.rel (!%p10_p4) target bundleno = 1 (0x1), region = 62 }

// kernel: bert_encoder_forward.6
= control target key start
LH: loop header
LB: loop body
LE: loop exit
PB: predicated region body
PF: predicated region fallthrough
CT: control target
= control target key end

     0   :  { %s1640_s27 = smov 0   ;;  %s1876_s0 = inlined_call_operand.vmem [shape: bf16[2,32,128], index: 0, kind: input, shape index: {}]   ;;  %s1877_s1 = inlined_call_operand.vmem [shape: f32[2,1,32], index: 1, kind: input, shape index: {}]   ;;  %s1878_s2 = inlined_call_operand.vmem [shape: bf16[128,384], index: 2, kind: input, shape index: {}]   ;;  %s1879_s3 = inlined_call_operand.vmem [shape: f32[1,384], index: 3, kind: input, shape index: {}]   ;;  %s1880_s4 = inlined_call_operand.vmem [shape: bf16[128,128], index: 4, kind: input, shape index: {}]   ;;  %s1881_s5 = inlined_call_operand.vmem [shape: f32[1,128], index: 5, kind: input, shape index: {}]   ;;  %s1882_s6 = inlined_call_operand.vmem [shape: f32[1,128], index: 6, kind: input, shape index: {}]   ;;  %s1883_s7 = inlined_call_operand.vmem [shape: f32[1,128], index: 7, kind: input, shape index: {}]   ;;  %s1884_s8 = inlined_call_operand.vmem [shape: bf16[2,32,128], index: 8, kind: output, shape index: {}]  }
   0x1 LB: > { %s1301_s28 = sadd.s32 4294967295, %s1591_s27   ;;  %p1305_p0 = scmp.ge.s32.totalorder %s1591_s27, 1  ;;  %s1591_s27 = sphi %s1640_s27, %s18_s27  }
   0x2   : > { %p270_p1 = scmp.lt.s32.totalorder %s1591_s27, 3 }
   0x4   : > { %p271_p2 = pnand %p1305_p0, %p270_p1 }
   0x5   : > { %v1501_v0 = vld [vmem:[%s1878_s2 + $0x4] ss:$12 sps:$4 sm:$0xff] (!%p271_p2)   ;;  %p307_p3 = scmp.lt.s32.totalorder (!%p271_p2), %s1301_s28, 1  ;;  %v1503_v1 = vld [vmem:[%s1878_s2] ss:$12 sps:$4 sm:$0xff] (!%p271_p2)   ;;  %v1593_v2 = vmov (!%p271_p2), 0   ;;  %v359_v27 = vlaneseq (!%p271_p2) }
   0x6   : > { %274 = sbr.rel (%p271_p2) target bundleno = 2261 (0x8d5), region = 52  ;;  %546 = vmatprep.mubr.bf16.mxu0 (!%p271_p2), %v1593_v2  ;;  %514 = vmatprep.subr.bf16.mxu0 (!%p271_p2), %v1501_v0  ;;  %v1504_v3 = vld [vmem:[%s1878_s2 + $0x1c] ss:$12 sps:$4 sm:$0xff] (!%p271_p2)   ;;  %v1506_v4 = vld [vmem:[%s1878_s2 + $0x18] ss:$12 sps:$4 sm:$0xff] (!%p271_p2)   ;;  %vm623_vm0 = vcmask (!%p271_p2), 523264  }
   0x7   : > { %515 = vmatpush1.bf16.msra.mxu0 (!%p271_p2), %v1503_v1  ;;  %v1507_v5 = vld [vmem:[%s1878_s2 + $0x34] ss:$12 sps:$4 sm:$0xff] (!%p271_p2)   ;;  %v1509_v6 = vld [vmem:[%s1878_s2 + $0x30] ss:$12 sps:$4 sm:$0xff] (!%p271_p2)   ;;  %v1510_v7 = vld [vmem:[%s1878_s2 + $0x4c] ss:$12 sps:$4 sm:$0xff] (!%p271_p2)  }
   0x8   : > { %516 = vmatprep.subr.bf16.mxu0 (!%p271_p2), %v1504_v3  ;;  %v1512_v9 = vld [vmem:[%s1878_s2 + $0x48] ss:$12 sps:$4 sm:$0xff] (!%p271_p2)   ;;  %v1513_v10 = vld [vmem:[%s1878_s2 + $0x64] ss:$12 sps:$4 sm:$0xff] (!%p271_p2)   ;;  %v1528_v12 = vld [vmem:[%s1878_s2 + $0x20] ss:$12 sps:$4 sm:$0xff] (!%p271_p2)  }
   0x9   : > { %v1527_v11 = vld [vmem:[%s1878_s2 + $0x8] ss:$12 sps:$4 sm:$0xff] (!%p271_p2)   ;;  %v1515_v13 = vld [vmem:[%s1878_s2 + $0x60] ss:$12 sps:$4 sm:$0xff] (!%p271_p2)   ;;  %v1529_v15 = vld [vmem:[%s1878_s2 + $0x38] ss:$12 sps:$4 sm:$0xff] (!%p271_p2)  }
   0xa   : > { %1415 = vmatprep.subr.bf16.mxu1 (!%p271_p2), %v1527_v11  ;;  %v1516_v14 = vld [vmem:[%s1878_s2 + $0x7c] ss:$12 sps:$4 sm:$0xff] (!%p271_p2)   ;;  %v1518_v16 = vld [vmem:[%s1878_s2 + $0x78] ss:$12 sps:$4 sm:$0xff] (!%p271_p2)   ;;  %v1519_v17 = vld [vmem:[%s1878_s2 + $0x94] ss:$12 sps:$4 sm:$0xff] (!%p271_p2)  }
   0xb   : > { %517 = vmatpush1.bf16.msra.mxu0 (!%p271_p2), %v1506_v4  ;;  %1416 = vmatpush3.bf16.msra.mxu1 (!%p271_p2), %v1527_v11  ;;  %v1530_v18 = vld [vmem:[%s1878_s2 + $0x50] ss:$12 sps:$4 sm:$0xff] (!%p271_p2)   ;;  %v1522_v20 = vld [vmem:[%s1878_s2 + $0xac] ss:$12 sps:$4 sm:$0xff] (!%p271_p2)   ;;  %v1531_v21 = vld [vmem:[%s1878_s2 + $0x68] ss:$12 sps:$4 sm:$0xff] (!%p271_p2)  }
   0xc   : > { %518 = vmatprep.subr.bf16.mxu0 (!%p271_p2), %v1507_v5  ;;  %1417 = vmatprep.subr.bf16.mxu1 (!%p271_p2), %v1528_v12  ;;  %v1521_v19 = vld [vmem:[%s1878_s2 + $0x90] ss:$12 sps:$4 sm:$0xff] (!%p271_p2)   ;;  %v1524_v22 = vld [vmem:[%s1878_s2 + $0xa8] ss:$12 sps:$4 sm:$0xff] (!%p271_p2)   ;;  %v1532_v23 = vld [vmem:[%s1878_s2 + $0x80] ss:$12 sps:$4 sm:$0xff] (!%p271_p2)  }
   0xd   : > { %s1886_s28 = smov (!%p307_p3, %s1301_s28), 1  ;;  %v1533_v24 = vld [vmem:[%s1878_s2 + $0x98] ss:$12 sps:$4 sm:$0xff]   ;;  %v1534_v26 = vld [vmem:[%s1878_s2 + $0xb0] ss:$12 sps:$4 sm:$0xff]   ;;  %v360_v28 = vshrl.u32 %v359_v27, 7 }
   0xe   : > { %s1362_s17 = sshll.u32 %s1886_s28, 4  ;;  %v357_v30 = vld [vmem:[%s1879_s3] sm:$0x7]  ;;  %s314_s26 = scalar_lea.vmem %s1877_s1, %s1886_s28  ;;  %vm699_vm1 = vcmask 261120   ;;  %vm1011_vm2 = vcmask 1048064  }
   0xf   : > { %s1674_s22 = scalar_lea.vmem %s1876_s0, %s1362_s17  ;;  %519 = vmatpush1.bf16.msra.mxu0 %v1509_v6  ;;  %1418 = vmatpush3.bf16.msra.mxu1 %v1528_v12  ;;  %v361_v29 = vsub.s32 0, %v360_v28  ;;  %v365_v31 = vsub.s32 1, %v360_v28  ;;  %v369_v44 = vsub.s32 2, %v360_v28  ;;  %v1775_v4 = vld [vmem:[%s314_s26] ss:$0 sm:$0xff]  ;;  %s1594_s29 = smov 64  }
  0x10   : > { %v1680_v8 = vld [vmem:[%s1674_s22] sm:$0xff]   ;;  %520 = vmatprep.subr.bf16.mxu0 %v1510_v7  ;;  %1419 = vmatprep.subr.bf16.mxu1 %v1529_v15  ;;  %v1733_v25 = vld [vmem:[%s1674_s22 + $0x8] sm:$0xff]   ;;  %s319_s13 = scalar_lea.vmem %s1884_s8, %s1362_s17 }
  0x11   : > { %1431 = vmatprep.mubr.bf16.mxu1 %v1680_v8  ;;  %v362_v32 = vrot.slane %v357_v30, %v361_v29  ;;  %v366_v34 = vrot.slane %v357_v30, %v365_v31  ;;  %v370_v49 = vrot.slane %v357_v30, %v369_v44 }
  0x13   : > { %521 = vmatpush1.bf16.msra.mxu0 %v1512_v9  ;;  %1420 = vmatpush3.bf16.msra.mxu1 %v1529_v15 }
  0x14   : > { %522 = vmatprep.subr.bf16.mxu0 %v1513_v10  ;;  %1421 = vmatprep.subr.bf16.mxu1 %v1530_v18 }
  0x17   : > { %523 = vmatpush1.bf16.msra.mxu0 %v1515_v13  ;;  %1422 = vmatpush3.bf16.msra.mxu1 %v1530_v18 }
  0x18   : > { %524 = vmatprep.subr.bf16.mxu0 %v1516_v14  ;;  %1423 = vmatprep.subr.bf16.mxu1 %v1531_v21 }
  0x1b   : > { %525 = vmatpush1.bf16.msra.mxu0 %v1518_v16  ;;  %1424 = vmatpush3.bf16.msra.mxu1 %v1531_v21 }
  0x1c   : > { %526 = vmatprep.subr.bf16.mxu0 %v1519_v17  ;;  %1425 = vmatprep.subr.bf16.mxu1 %v1532_v23 }
  0x1f   : > { %527 = vmatpush1.bf16.msra.mxu0 %v1521_v19  ;;  %1426 = vmatpush3.bf16.msra.mxu1 %v1532_v23 }
  0x20   : > { %528 = vmatprep.subr.bf16.mxu0 %v1522_v20  ;;  %1427 = vmatprep.subr.bf16.mxu1 %v1533_v24 }
  0x23   : > { %529 = vmatpush1.bf16.msra.mxu0 %v1524_v22  ;;  %1428 = vmatpush3.bf16.msra.mxu1 %v1533_v24 }
  0x24   : > { %1429 = vmatprep.subr.bf16.mxu1 %v1534_v26 }
  0x26   : > { %547 = vmatmul.mubr.bf16.vlgmr.msra.gmra.mrb[0].mxu0 %v1680_v8 }
  0x27   : > { %556 = vmatprep.mubr.bf16.mxu0 %v1593_v2  ;;  %1430 = vmatpush3.bf16.msra.mxu1 %v1534_v26 }
  0x2a   : > { %1432 = vmatmul.mubr.bf16.vlgmr.msra.gmra.mrb[0].mxu1 %v1733_v25 }
  0x2e   : > { %557 = vmatmul.mubr.bf16.gmra.mrb[4].mxu0 %v1733_v25 }
  0xf9   : > { %v548_v33 = vpop.f32.mrb[0].mxu0 }
  0xfa   : > { %v550_v35 = vpop.f32.mrb[1].mxu0  ;;  %v549_v37 = vadd.f32 %v548_v33, %v362_v32 }
  0xfb   : > { %v552_v36 = vpop.f32.mrb[2].mxu0  ;;  %v551_v40 = vadd.f32 %v550_v35, %v366_v34 }
  0xfc   : > { %v553_v38 = vadd.f32 %v552_v36, %v362_v32  ;;  %v554_v39 = vpop.f32.mrb[3].mxu0 }
  0xfd   : > { %v555_v41 = vadd.f32 %v554_v39, %v366_v34  ;;  %v1433_v55 = vpop.f32.mrb[0].mxu1 }
  0xfe   : > { %v1743_v42 = vpack.c.bf16 %v553_v38, %v549_v37  ;;  %v610_v57 = vadd.f32 %v1433_v55, %v370_v49  ;;  %v601_v58 = vpop.f32.mrb[1].mxu1 }
  0xff   : > { %v1745_v43 = vpack.c.bf16 %v555_v41, %v551_v40  ;;  %v602_v60 = vadd.f32 %v601_v58, %v370_v49  ;;  %v1434_v61 = vpop.f32.mrb[2].mxu1 }
 0x100   : > { %1439 = vmatprep.mubr.msk.bf16.mxu1 %vm623_vm0, %v1743_v42  ;;  %v613_v62 = vadd.f32 %v1434_v61, %v370_v49  ;;  %v604_v63 = vpop.f32.mrb[3].mxu1 }
 0x101   : > { %v558_v45 = vpop.f32.mrb[4].mxu0  ;;  %1487 = vmatprep.subr.msk.bf16.mxu1 %vm623_vm0, %v1745_v43  ;;  %v631_v46 = vsel %vm623_vm0, %v1745_v43, 0  ;;  %v605_v1 = vadd.f32 %v604_v63, %v370_v49 }
 0x102   : > { %v560_v47 = vpop.f32.mrb[5].mxu0  ;;  %1436 = vmatpush3.bf16.xpose.msra.mxu1 %v631_v46  ;;  %v559_v50 = vadd.f32 %v558_v45, %v362_v32  ;;  %v1761_v2 = vpack.c.bf16 %v613_v62, %v610_v57 }
 0x103   : > { %v562_v48 = vpop.f32.mrb[6].mxu0  ;;  %v561_v53 = vadd.f32 %v560_v47, %v366_v34  ;;  %v1763_v3 = vpack.c.bf16 %v605_v1, %v602_v60 }
 0x104   : > { %v563_v51 = vadd.f32 %v562_v48, %v362_v32  ;;  %v564_v52 = vpop.f32.mrb[7].mxu0 }
 0x105   : > { %v565_v54 = vadd.f32 %v564_v52, %v366_v34 }
 0x106   : > { %v1753_v56 = vpack.c.bf16 %v563_v51, %v559_v50 }
 0x107   : > { %v1755_v59 = vpack.c.bf16 %v565_v54, %v561_v53 }
 0x109   : > { %1488 = vmatprep.subr.msk.bf16.mxu1 %vm623_vm0, %v1755_v59  ;;  %v634_v0 = vsel %vm623_vm0, %v1755_v59, 0 }
 0x10a   : > { %1438 = vmatpush3.bf16.xpose.msra.mxu1 %v634_v0 }
 0x10b   : > { %1443 = vmatprep.subr.bf16.mxu1 %v1763_v3 }
 0x111   : > { %1440 = vmatmul.mubr.msk.bf16.vlgmr.msra.gmra.mrb[4].mxu1 %vm623_vm0, %v1753_v56 }
 0x112   : > { %1444 = vmatpush3.bf16.msra.mxu1 %v1763_v3 }
 0x113   : > { %1445 = vmatprep.subr.bf16.mxu1 %v1761_v2 }
 0x116   : > { %1446 = vmatpush3.bf16.msra.mxu1 %v1761_v2 }
 0x1e4   : > { %v1441_v5 = vpop.f32.mrb[4].mxu1 }
 0x1e5   : > { %v687_v6 = vmul.f32 0.125, %v1441_v5  ;;  %v670_v7 = vpop.f32.mrb[5].mxu1 }
 0x1e6   : > { %v685_v9 = vmul.f32 0.125, %v670_v7  ;;  %v1442_v10 = vpop.f32.mrb[6].mxu1 }
 0x1e7   : > { %v688_v11 = vmul.f32 0.125, %v1442_v10  ;;  %v673_v12 = vpop.f32.mrb[7].mxu1  ;;  %v697_v13 = vadd.f32 %v1775_v4, %v687_v6 }
 0x1e8   : > { %v686_v14 = vmul.f32 0.125, %v673_v12  ;;  %v695_v15 = vadd.f32 %v1775_v4, %v685_v9 }
 0x1e9   : > { %v706_v16 = vsel %vm699_vm1, %v697_v13, -inf  ;;  %v698_v17 = vadd.f32 %v1775_v4, %v688_v11 }
 0x1ea   : > { %707 = vmax.xlane.f32.xlu1 %v706_v16  ;;  %v700_v18 = vsel %vm699_vm1, %v695_v15, -inf  ;;  %v696_v19 = vadd.f32 %v1775_v4, %v686_v14 }
 0x1eb   : > { %701 = vmax.xlane.f32.xlu0 %v700_v18  ;;  %v709_v20 = vsel %vm699_vm1, %v698_v17, -inf }
 0x1ec   : > { %v703_v21 = vsel %vm699_vm1, %v696_v19, -inf }
 0x1ee   : > { %710 = vmax.xlane.f32.xlu1 %v709_v20 }
 0x1ef   : > { %704 = vmax.xlane.f32.xlu0 %v703_v21 }
 0x277   : > { %v708_v22 = vpop.xlane.xlu1 %707 }
 0x278   : > { %v714_v23 = vsub.f32 %v697_v13, %v708_v22  ;;  %v702_v24 = vpop.xlane.xlu0 %701 }
 0x279   : > { %v712_v26 = vsub.f32 %v695_v15, %v702_v24 }
 0x27a   : > { %v720_v27 = vmul.f32 1.442695, %v714_v23 }
 0x27b   : > { %v716_v28 = vmul.f32 1.442695, %v712_v26  ;;  %v711_v29 = vpop.xlane.xlu1 %710 }
 0x27c   : > { %1545 = vpow2.f32 %v720_v27  ;;  %v715_v30 = vsub.f32 %v698_v17, %v711_v29  ;;  %v705_v31 = vpop.xlane.xlu0 %704 }
 0x27d   : > { %v713_v32 = vsub.f32 %v696_v19, %v705_v31  ;;  %1547 = vpow2.f32 %v716_v28 }
 0x27e   : > { %v722_v33 = vmul.f32 1.442695, %v715_v30 }
 0x27f   : > { %v718_v34 = vmul.f32 1.442695, %v713_v32 }
 0x281   : > { %1549 = vpow2.f32 %v718_v34 }
 0x282   : > { %1551 = vpow2.f32 %v722_v33 }
 0x286   : > { %v1546_v35 = vpop.eup %1545 }
 0x287   : > { %v730_v36 = vsel %vm699_vm1, %v1546_v35, 0.0  ;;  %v1548_v37 = vpop.eup %1547 }
 0x288   : > { %731 = vadd.xlane.f32.xlu0 %v730_v36  ;;  %v724_v39 = vsel %vm699_vm1, %v1548_v37, 0.0 }
 0x28b   : > { %v1550_v38 = vpop.eup %1549 }
 0x28c   : > { %725 = vadd.xlane.f32.xlu0 %v724_v39  ;;  %v727_v40 = vsel %vm699_vm1, %v1550_v38, 0.0  ;;  %v1552_v41 = vpop.eup %1551 }
 0x28d   : > { %728 = vadd.xlane.f32.xlu1 %v727_v40  ;;  %v733_v44 = vsel %vm699_vm1, %v1552_v41, 0.0 }
 0x291   : > { %734 = vadd.xlane.f32.xlu1 %v733_v44 }
 0x2a2   : > { %813 = vrot.lane.b32.xlu0 %v1745_v43, %s1594_s29  ;;  %815 = vrot.lane.b32.xlu1 %v1755_v59, %s1594_s29 }
 0x2a6   : > { %807 = vrot.lane.b32.xlu1 %v1743_v42, %s1594_s29 }
 0x2aa   : > { %809 = vrot.lane.b32.xlu1 %v1753_v56, %s1594_s29 }
 0x315   : > { %v732_v45 = vpop.xlane.xlu0 %731 }
 0x319   : > { %v726_v46 = vpop.xlane.xlu0 %725 }
 0x31a   : > { %1553 = vrcp.f32 %v726_v46  ;;  %v729_v47 = vpop.xlane.xlu1 %728 }
 0x31b   : > { %1555 = vrcp.f32 %v729_v47 }
 0x31c   : > { %1557 = vrcp.f32 %v732_v45 }
 0x31d   : > { %v814_v48 = vpop.permute.xlu0 %813 }
 0x31e   : > { %v735_v49 = vpop.xlane.xlu1 %734  ;;  %1489 = vmatprep.subr.msk.bf16.mxu1 %vm623_vm0, %v814_v48  ;;  %v824_v59 = vsel %vm623_vm0, %v814_v48, 0 }
 0x31f   : > { %1559 = vrcp.f32 %v735_v49 }
 0x322   : > { %v816_v42 = vpop.permute.xlu1 %815 }
 0x323   : > { %v827_v61 = vsel %vm623_vm0, %v816_v42, 0 }
 0x324   : > { %v1554_v43 = vpop.eup %1553 }
 0x325   : > { %v1556_v50 = vpop.eup %1555  ;;  %v740_v51 = vmul.f32 %v1554_v43, %v1548_v37 }
 0x326   : > { %v741_v52 = vmul.f32 %v1556_v50, %v1550_v38  ;;  %v1558_v53 = vpop.eup %1557  ;;  %v808_v60 = vpop.permute.xlu1 %807 }
 0x327   : > { %v742_v56 = vmul.f32 %v1558_v53, %v1546_v35 }
 0x328   : > { %v744_v54 = vpack.c.bf16 %v741_v52, %v740_v51 }
 0x329   : > { %v1560_v55 = vpop.eup %1559 }
 0x32a   : > { %v743_v57 = vmul.f32 %v1560_v55, %v1552_v41  ;;  %1447 = vmatprep.mubr.msk.bf16.mxu1 %vm699_vm1, %v744_v54  ;;  %v810_v62 = vpop.permute.xlu1 %809 }
 0x32c   : > { %v745_v58 = vpack.c.bf16 %v743_v57, %v742_v56  ;;  %v1535_v57 = vld [vmem:[%s1880_s4] sm:$0xff]  }
 0x32e   : > { %1448 = vmatmul.mubr.msk.bf16.vlgmr.msra.gmra.mrb[8].mxu1 %vm699_vm1, %v745_v58  ;;  %v1536_v58 = vld [vmem:[%s1880_s4 + $0x8] sm:$0xff]  }
 0x32f   : > { %1452 = vmatpush3.bf16.xpose.msra.mxu1 %v824_v59  ;;  %1455 = vmatprep.mubr.msk.bf16.mxu1 %vm623_vm0, %v808_v60  ;;  %v1537_v59 = vld [vmem:[%s1880_s4 + $0x10] sm:$0xff]   ;;  %v1538_v60 = vld [vmem:[%s1880_s4 + $0x18] sm:$0xff]  }
 0x330   : > { %1490 = vmatprep.subr.msk.bf16.mxu1 %vm623_vm0, %v816_v42 }
 0x337   : > { %1454 = vmatpush3.bf16.xpose.msra.mxu1 %v827_v61  ;;  %v1539_v61 = vld [vmem:[%s1880_s4 + $0x20] sm:$0xff]  }
 0x33e   : > { %1456 = vmatmul.mubr.msk.bf16.vlgmr.msra.gmra.mrb[12].mxu1 %vm623_vm0, %v810_v62  ;;  %v1540_v62 = vld [vmem:[%s1880_s4 + $0x28] sm:$0xff]  }
 0x401   : > { %v1449_v63 = vpop.f32.mrb[8].mxu1 }
 0x402   : > { %803 = vst.msk [vmem:[#allocation2 + $0x10] sm:$0xff] %vm623_vm0, %v1449_v63  ;;  %v786_v0 = vpop.f32.mrb[9].mxu1  ;;  %v1541_v63 = vld [vmem:[%s1880_s4 + $0x30] sm:$0xff]  }
 0x403   : > { %801 = vst.msk [vmem:[#allocation2] sm:$0xff] %vm623_vm0, %v786_v0  ;;  %v1450_v1 = vpop.f32.mrb[10].mxu1  ;;  %v1542_v0 = vld [vmem:[%s1880_s4 + $0x38] sm:$0xff]  }
 0x404   : > { %804 = vst.msk [vmem:[#allocation2 + $0x18] sm:$0xff] %vm623_vm0, %v1450_v1  ;;  %v789_v5 = vpop.f32.mrb[11].mxu1 }
 0x405   : > { %802 = vst.msk [vmem:[#allocation2 + $0x8] sm:$0xff] %vm623_vm0, %v789_v5 }
 0x411   : > { %v1457_v6 = vpop.f32.mrb[12].mxu1 }
 0x412   : > { %v863_v7 = vpop.f32.mrb[13].mxu1  ;;  %v880_v9 = vmul.f32 0.125, %v1457_v6 }
 0x413   : > { %v878_v10 = vmul.f32 0.125, %v863_v7  ;;  %v1458_v11 = vpop.f32.mrb[14].mxu1 }
 0x414   : > { %v866_v12 = vpop.f32.mrb[15].mxu1  ;;  %v881_v15 = vmul.f32 0.125, %v1458_v11  ;;  %v884_v18 = vadd.f32 %v1775_v4, %v880_v9 }
 0x415   : > { %v879_v13 = vmul.f32 0.125, %v866_v12  ;;  %v882_v14 = vadd.f32 %v1775_v4, %v878_v10 }
 0x416   : > { %v892_v20 = vsel %vm699_vm1, %v884_v18, -inf  ;;  %v885_v21 = vadd.f32 %v1775_v4, %v881_v15 }
 0x417   : > { %v883_v16 = vadd.f32 %v1775_v4, %v879_v13  ;;  %v886_v17 = vsel %vm699_vm1, %v882_v14, -inf }
 0x418   : > { %887 = vmax.xlane.f32.xlu0 %v886_v17  ;;  %v895_v22 = vsel %vm699_vm1, %v885_v21, -inf }
 0x419   : > { %v889_v19 = vsel %vm699_vm1, %v883_v16, -inf }
 0x41a   : > { %890 = vmax.xlane.f32.xlu1 %v889_v19  ;;  %v1345_v19 = vld [vmem:[%s1881_s5] ss:$0 sm:$0xff] }
 0x41c   : > { %893 = vmax.xlane.f32.xlu0 %v892_v20 }
 0x420   : > { %896 = vmax.xlane.f32.xlu0 %v895_v22 }
 0x4a5   : > { %v888_v23 = vpop.xlane.xlu0 %887 }
 0x4a6   : > { %v898_v24 = vsub.f32 %v882_v14, %v888_v23 }
 0x4a7   : > { %v891_v26 = vpop.xlane.xlu1 %890 }
 0x4a8   : > { %v902_v29 = vmul.f32 1.442695, %v898_v24  ;;  %v899_v30 = vsub.f32 %v883_v16, %v891_v26  ;;  %v1143_v26 = vunpack.c.h.bf16 %v1680_v8 }
 0x4a9   : > { %v894_v27 = vpop.xlane.xlu0 %893 }
 0x4aa   : > { %v900_v28 = vsub.f32 %v884_v18, %v894_v27  ;;  %v904_v34 = vmul.f32 1.442695, %v899_v30 }
 0x4ac   : > { %v906_v31 = vmul.f32 1.442695, %v900_v28 }
 0x4ad   : > { %v897_v32 = vpop.xlane.xlu0 %896 }
 0x4ae   : > { %1561 = vpow2.f32 %v906_v31  ;;  %v901_v33 = vsub.f32 %v885_v21, %v897_v32  ;;  %v1142_v21 = vunpack.c.l.bf16 %v1680_v8  ;;  %v1144_v31 = vunpack.c.l.bf16 %v1733_v25 }
 0x4af   : > { %1563 = vpow2.f32 %v902_v29 }
 0x4b0   : > { %v908_v35 = vmul.f32 1.442695, %v901_v33 }
 0x4b2   : > { %1565 = vpow2.f32 %v908_v35  ;;  %v1145_v35 = vunpack.c.h.bf16 %v1733_v25 }
 0x4b3   : > { %1567 = vpow2.f32 %v904_v34 }
 0x4b8   : > { %v1562_v4 = vpop.eup %1561 }
 0x4b9   : > { %v916_v36 = vsel %vm699_vm1, %v1562_v4, 0.0  ;;  %v1564_v37 = vpop.eup %1563 }
 0x4ba   : > { %917 = vadd.xlane.f32.xlu0 %v916_v36  ;;  %v910_v39 = vsel %vm699_vm1, %v1564_v37, 0.0 }
 0x4bc   : > { %v1566_v38 = vpop.eup %1565 }
 0x4bd   : > { %v919_v40 = vsel %vm699_vm1, %v1566_v38, 0.0  ;;  %v1568_v41 = vpop.eup %1567 }
 0x4be   : > { %911 = vadd.xlane.f32.xlu0 %v910_v39  ;;  %920 = vadd.xlane.f32.xlu1 %v919_v40  ;;  %v913_v44 = vsel %vm699_vm1, %v1568_v41, 0.0 }
 0x4c2   : > { %914 = vadd.xlane.f32.xlu1 %v913_v44 }
 0x4d3   : > { %936 = vrot.lane.b32.xlu1 %v1761_v2, %s1594_s29 }
 0x4d4   : > { %934 = vrot.lane.b32.xlu0 %v1763_v3, %s1594_s29 }
 0x547   : > { %v918_v45 = vpop.xlane.xlu0 %917 }
 0x54b   : > { %v912_v46 = vpop.xlane.xlu0 %911  ;;  %v921_v47 = vpop.xlane.xlu1 %920 }
 0x54c   : > { %1569 = vrcp.f32 %v921_v47 }
 0x54d   : > { %1571 = vrcp.f32 %v912_v46 }
 0x54e   : > { %1573 = vrcp.f32 %v918_v45 }
 0x54f   : > { %v935_v48 = vpop.permute.xlu0 %934  ;;  %v915_v49 = vpop.xlane.xlu1 %914 }
 0x550   : > { %1575 = vrcp.f32 %v915_v49  ;;  %1459 = vmatprep.subr.bf16.mxu0 %v935_v48 }
 0x551   : > { %1460 = vmatpush3.bf16.msra.mxu0 %v935_v48 }
 0x553   : > { %v937_v43 = vpop.permute.xlu1 %936 }
 0x554   : > { %1461 = vmatprep.subr.bf16.mxu0 %v937_v43 }
 0x555   : > { %1462 = vmatpush3.bf16.msra.mxu0 %v937_v43 }
 0x556   : > { %v1570_v50 = vpop.eup %1569  ;;  %1467 = vmatprep.subr.bf16.mxu0 %v1535_v57 }
 0x557   : > { %v1572_v51 = vpop.eup %1571  ;;  %v929_v53 = vmul.f32 %v1570_v50, %v1566_v38 }
 0x558   : > { %v1574_v2 = vpop.eup %1573  ;;  %v926_v3 = vmul.f32 %v1572_v51, %v1564_v37 }
 0x559   : > { %v928_v54 = vmul.f32 %v1574_v2, %v1562_v4 }
 0x55a   : > { %v1576_v52 = vpop.eup %1575 }
 0x55b   : > { %v927_v42 = vmul.f32 %v1576_v52, %v1568_v41  ;;  %v931_v56 = vpack.c.bf16 %v929_v53, %v928_v54 }
 0x55d   : > { %v930_v55 = vpack.c.bf16 %v927_v42, %v926_v3 }
 0x55f   : > { %1463 = vmatprep.mubr.msk.bf16.mxu0 %vm699_vm1, %v930_v55 }
 0x560   : > { %1464 = vmatmul.mubr.msk.bf16.vlgmr.msra.gmra.mrb[8].mxu0 %vm699_vm1, %v931_v56 }
 0x561   : > { %1468 = vmatpush3.bf16.msra.mxu0 %v1535_v57 }
 0x562   : > { %1469 = vmatprep.subr.bf16.mxu0 %v1536_v58 }
 0x565   : > { %1470 = vmatpush3.bf16.msra.mxu0 %v1536_v58 }
 0x566   : > { %1471 = vmatprep.subr.bf16.mxu0 %v1537_v59 }
 0x569   : > { %1472 = vmatpush3.bf16.msra.mxu0 %v1537_v59 }
 0x56a   : > { %1473 = vmatprep.subr.bf16.mxu0 %v1538_v60 }
 0x56d   : > { %1474 = vmatpush3.bf16.msra.mxu0 %v1538_v60 }
 0x56e   : > { %1475 = vmatprep.subr.bf16.mxu0 %v1539_v61 }
 0x571   : > { %1476 = vmatpush3.bf16.msra.mxu0 %v1539_v61  ;;  %v1354_v61 = vld [vmem:[%s1882_s6] ss:$0 sm:$0xff] }
 0x572   : > { %1477 = vmatprep.subr.bf16.mxu0 %v1540_v62 }
 0x575   : > { %1478 = vmatpush3.bf16.msra.mxu0 %v1540_v62 }
 0x576   : > { %1479 = vmatprep.subr.bf16.mxu0 %v1541_v63 }
 0x579   : > { %1480 = vmatpush3.bf16.msra.mxu0 %v1541_v63 }
 0x57a   : > { %1481 = vmatprep.subr.bf16.mxu0 %v1542_v0 }
 0x57d   : > { %1482 = vmatpush3.bf16.msra.mxu0 %v1542_v0 }
 0x633   : > { %v1465_v1 = vpop.f32.mrb[8].mxu0 }
 0x634   : > { %1003 = vrot.lane.b32.xlu0 %v1465_v1, %s1594_s29  ;;  %v980_v5 = vpop.f32.mrb[9].mxu0 }
 0x635   : > { %999 = vrot.lane.b32.xlu1 %v980_v5, %s1594_s29  ;;  %v1466_v6 = vpop.f32.mrb[10].mxu0 }
 0x636   : > { %v983_v7 = vpop.f32.mrb[11].mxu0 }
 0x639   : > { %1001 = vrot.lane.b32.xlu1 %v983_v7, %s1594_s29 }
 0x63d   : > { %1005 = vrot.lane.b32.xlu1 %v1466_v6, %s1594_s29  ;;  %v1355_v6 = vld [vmem:[%s1883_s7] ss:$0 sm:$0xff] }
 0x6a6   : > { %v1004_v9 = vpop.permute.xlu0 %1003 }
 0x6a7   : > { %1014 = vst.msk [vmem:[#allocation2 + $0x10] sm:$0xff] %vm1011_vm2, %v1004_v9  ;;  %v1000_v10 = vpop.permute.xlu1 %999 }
 0x6a8   : > { %1012 = vst.msk [vmem:[#allocation2] sm:$0xff] %vm1011_vm2, %v1000_v10 }
 0x6ab   : > { %v1002_v11 = vpop.permute.xlu1 %1001 }
 0x6ac   : > { %1013 = vst.msk [vmem:[#allocation2 + $0x8] sm:$0xff] %vm1011_vm2, %v1002_v11 }
 0x6ae   : > { %v1018_v16 = vld [vmem:[#allocation2 + $0x10] sm:$0xff] }
 0x6af   : > { %v1006_v12 = vpop.permute.xlu1 %1005  ;;  %v1016_v13 = vld [vmem:[#allocation2] sm:$0xff] }
 0x6b0   : > { %1015 = vst.msk [vmem:[#allocation2 + $0x18] sm:$0xff] %vm1011_vm2, %v1006_v12 }
 0x6b3   : > { %v1017_v14 = vld [vmem:[#allocation2 + $0x8] sm:$0xff] }
 0x6b4   : > { %v1020_v15 = vpack.c.bf16 %v1017_v14, %v1016_v13 }
 0x6b6   : > { %1483 = vmatprep.mubr.bf16.mxu0 %v1020_v15 }
 0x6b7   : > { %v1019_v17 = vld [vmem:[#allocation2 + $0x18] sm:$0xff] }
 0x6b8   : > { %v1021_v18 = vpack.c.bf16 %v1019_v17, %v1018_v16 }
 0x6ba   : > { %1484 = vmatmul.mubr.bf16.vlgmr.msra.gmra.mrb[12].mxu0 %v1021_v18 }
 0x78d   : > { %v1485_v20 = vpop.f32.mrb[12].mxu0 }
 0x78e   : > { %v1127_v22 = vpop.f32.mrb[13].mxu0  ;;  %v1136_v28 = vadd.f32 %v1485_v20, %v1345_v19 }
 0x78f   : > { %v1128_v23 = vadd.f32 %v1345_v19, %v1127_v22  ;;  %v1486_v24 = vpop.f32.mrb[14].mxu0 }
 0x790   : > { %v1130_v27 = vpop.f32.mrb[15].mxu0  ;;  %v1139_v33 = vadd.f32 %v1486_v24, %v1345_v19  ;;  %v1148_v34 = vadd.f32 %v1144_v31, %v1136_v28 }
 0x791   : > { %v1131_v29 = vadd.f32 %v1345_v19, %v1130_v27  ;;  %v1146_v30 = vadd.f32 %v1142_v21, %v1128_v23 }
 0x792   : > { %v1149_v4 = vadd.f32 %v1145_v35, %v1139_v33 }
 0x793   : > { %1152 = vadd.xlane.f32.xlu0 %v1146_v30  ;;  %v1147_v32 = vadd.f32 %v1143_v26, %v1131_v29 }
 0x795   : > { %1154 = vadd.xlane.f32.xlu1 %v1147_v32 }
 0x797   : > { %1156 = vadd.xlane.f32.xlu0 %v1148_v34 }
 0x79b   : > { %1158 = vadd.xlane.f32.xlu0 %v1149_v4 }
 0x820   : > { %v1153_v36 = vpop.xlane.xlu0 %1152 }
 0x821   : > { %v1161_v37 = vmul.f32 0.0078125, %v1153_v36 }
 0x822   : > { %v1155_v38 = vpop.xlane.xlu1 %1154 }
 0x823   : > { %v1165_v8 = vsub.f32 %v1146_v30, %v1161_v37  ;;  %v1162_v39 = vmul.f32 0.0078125, %v1155_v38 }
 0x824   : > { %v1157_v40 = vpop.xlane.xlu0 %1156 }
 0x825   : > { %v1166_v41 = vsub.f32 %v1147_v32, %v1162_v39  ;;  %v1163_v44 = vmul.f32 0.0078125, %v1157_v40  ;;  %v1169_v45 = vmul.f32 %v1165_v8, %v1165_v8 }
 0x827   : > { %v1167_v46 = vsub.f32 %v1148_v34, %v1163_v44  ;;  %1173 = vadd.xlane.f32.xlu0 %v1169_v45  ;;  %v1170_v47 = vmul.f32 %v1166_v41, %v1166_v41 }
 0x828   : > { %v1159_v48 = vpop.xlane.xlu0 %1158 }
 0x829   : > { %v1164_v49 = vmul.f32 0.0078125, %v1159_v48  ;;  %1175 = vadd.xlane.f32.xlu1 %v1170_v47  ;;  %v1171_v43 = vmul.f32 %v1167_v46, %v1167_v46 }
 0x82b   : > { %v1168_v25 = vsub.f32 %v1149_v4, %v1164_v49  ;;  %1177 = vadd.xlane.f32.xlu0 %v1171_v43 }
 0x82d   : > { %v1172_v50 = vmul.f32 %v1168_v25, %v1168_v25 }
 0x82f   : > { %1179 = vadd.xlane.f32.xlu1 %v1172_v50 }
 0x8b4   : > { %v1174_v51 = vpop.xlane.xlu0 %1173 }
 0x8b5   : > { %v1181_v2 = vmul.f32 0.0078125, %v1174_v51 }
 0x8b6   : > { %v1176_v52 = vpop.xlane.xlu1 %1175 }
 0x8b7   : > { %v1185_v53 = vadd.f32 1e-12, %v1181_v2  ;;  %v1182_v3 = vmul.f32 0.0078125, %v1176_v52 }
 0x8b8   : > { %v1178_v42 = vpop.xlane.xlu0 %1177 }
 0x8b9   : > { %1577 = vrsqrt.f32 %v1185_v53  ;;  %v1186_v54 = vadd.f32 1e-12, %v1182_v3  ;;  %v1183_v55 = vmul.f32 0.0078125, %v1178_v42 }
 0x8bb   : > { %1579 = vrsqrt.f32 %v1186_v54  ;;  %v1187_v56 = vadd.f32 1e-12, %v1183_v55 }
 0x8bc   : > { %v1180_v57 = vpop.xlane.xlu1 %1179 }
 0x8bd   : > { %1581 = vrsqrt.f32 %v1187_v56  ;;  %v1184_v58 = vmul.f32 0.0078125, %v1180_v57 }
 0x8bf   : > { %v1188_v59 = vadd.f32 1e-12, %v1184_v58 }
 0x8c1   : > { %1583 = vrsqrt.f32 %v1188_v59 }
 0x8c3   : > { %v1578_v60 = vpop.eup %1577 }
 0x8c4   : > { %v1193_v62 = vmul.f32 %v1578_v60, %v1165_v8 }
 0x8c5   : > { %v1580_v63 = vpop.eup %1579 }
 0x8c6   : > { %v1203_v0 = vmul.f32 %v1354_v61, %v1193_v62  ;;  %v1194_v1 = vmul.f32 %v1580_v63, %v1166_v41 }
 0x8c7   : > { %v1582_v5 = vpop.eup %1581 }
 0x8c8   : > { %v1204_v7 = vmul.f32 %v1354_v61, %v1194_v1  ;;  %v1195_v9 = vmul.f32 %v1582_v5, %v1167_v46  ;;  %v1213_v10 = vadd.f32 %v1355_v6, %v1203_v0 }
 0x8ca   : > { %v1214_v11 = vadd.f32 %v1355_v6, %v1204_v7  ;;  %v1205_v14 = vmul.f32 %v1354_v61, %v1195_v9 }
 0x8cb   : > { %v1584_v12 = vpop.eup %1583 }
 0x8cc   : > { %v1371_v13 = vpack.c.bf16 %v1214_v11, %v1213_v10  ;;  %v1196_v15 = vmul.f32 %v1584_v12, %v1168_v25  ;;  %v1215_v17 = vadd.f32 %v1355_v6, %v1205_v14 }
 0x8ce   : > { %1372 = vst [vmem:[%s319_s13] sm:$0xff] %v1371_v13   ;;  %v1206_v16 = vmul.f32 %v1354_v61, %v1196_v15 }
 0x8d0   : > { %v1216_v18 = vadd.f32 %v1355_v6, %v1206_v16 }
 0x8d2   : > { %v1376_v19 = vpack.c.bf16 %v1216_v18, %v1215_v17 }
 0x8d4   : > { %1378 = vst [vmem:[%s319_s13 + $0x8] sm:$0xff] %v1376_v19  }
 0x8d5 PF: > { %s18_s27 = sadd.s32 1, %s1591_s27  }
 0x8d6   : > { %p15_p4 = scmp.ge.s32.totalorder %s18_s27, 4  }
 0x8d8   :  { %17 = sbr.rel (!%p15_p4) target bundleno = 1 (0x1), region = 85 }

// kernel: bert_encoder_forward.7
= control target key start
LH: loop header
LB: loop body
LE: loop exit
PB: predicated region body
PF: predicated region fallthrough
CT: control target
= control target key end

     0   :  { %s1618_s24 = smov 0   ;;  %s1987_s0 = inlined_call_operand.vmem [shape: bf16[2,32,128], index: 0, kind: input, shape index: {}]   ;;  %s1988_s1 = inlined_call_operand.vmem [shape: bf16[128,512], index: 1, kind: input, shape index: {}]   ;;  %s1989_s2 = inlined_call_operand.vmem [shape: f32[1,512], index: 2, kind: input, shape index: {}]   ;;  %s1990_s3 = inlined_call_operand.vmem [shape: bf16[512,128], index: 3, kind: input, shape index: {}]   ;;  %s1991_s4 = inlined_call_operand.vmem [shape: f32[1,128], index: 4, kind: input, shape index: {}]   ;;  %s1992_s5 = inlined_call_operand.vmem [shape: f32[1,128], index: 5, kind: input, shape index: {}]   ;;  %s1993_s6 = inlined_call_operand.vmem [shape: f32[1,128], index: 6, kind: input, shape index: {}]   ;;  %s1994_s7 = inlined_call_operand.vmem [shape: bf16[2,32,128], index: 7, kind: output, shape index: {}]  }
   0x1 LB: > { %s1279_s25 = sadd.s32 4294967295, %s1575_s24   ;;  %p1283_p0 = scmp.ge.s32.totalorder %s1575_s24, 1  ;;  %s1575_s24 = sphi %s1618_s24, %s17_s24  }
   0x2   : > { %p237_p1 = scmp.lt.s32.totalorder %s1575_s24, 3 }
   0x4   : > { %p238_p2 = pnand %p1283_p0, %p237_p1 }
   0x5   : > { %v1445_v0 = vld [vmem:[%s1988_s1 + $0x4] ss:$16 sps:$4 sm:$0xff] (!%p238_p2)   ;;  %v1447_v1 = vld [vmem:[%s1988_s1 + $0xc] ss:$16 sps:$4 sm:$0xff] (!%p238_p2)   ;;  %v1577_v2 = vmov (!%p238_p2), 0   ;;  %p269_p3 = scmp.lt.s32.totalorder (!%p238_p2), %s1279_s25, 1 }
   0x6   : > { %241 = sbr.rel (%p238_p2) target bundleno = 839 (0x347), region = 48  ;;  %542 = vmatprep.mubr.bf16.mxu0 (!%p238_p2), %v1577_v2  ;;  %595 = vmatprep.mubr.bf16.mxu1 (!%p238_p2), %v1577_v2  ;;  %v1449_v3 = vld [vmem:[%s1988_s1] ss:$16 sps:$4 sm:$0xff] (!%p238_p2)   ;;  %v1450_v4 = vld [vmem:[%s1988_s1 + $0x8] ss:$16 sps:$4 sm:$0xff] (!%p238_p2)  }
   0x7   : > { %510 = vmatprep.subr.bf16.mxu0 (!%p238_p2), %v1445_v0  ;;  %563 = vmatprep.subr.bf16.mxu1 (!%p238_p2), %v1447_v1  ;;  %v1451_v5 = vld [vmem:[%s1988_s1 + $0x24] ss:$16 sps:$4 sm:$0xff] (!%p238_p2)   ;;  %v1453_v6 = vld [vmem:[%s1988_s1 + $0x2c] ss:$16 sps:$4 sm:$0xff] (!%p238_p2)   ;;  %v1455_v7 = vld [vmem:[%s1988_s1 + $0x20] ss:$16 sps:$4 sm:$0xff] (!%p238_p2)  }
   0x8   : > { %511 = vmatpush1.bf16.msra.mxu0 (!%p238_p2), %v1449_v3  ;;  %564 = vmatpush1.bf16.msra.mxu1 (!%p238_p2), %v1450_v4  ;;  %v1456_v8 = vld [vmem:[%s1988_s1 + $0x28] ss:$16 sps:$4 sm:$0xff] (!%p238_p2)   ;;  %v1457_v9 = vld [vmem:[%s1988_s1 + $0x44] ss:$16 sps:$4 sm:$0xff] (!%p238_p2)   ;;  %v1459_v10 = vld [vmem:[%s1988_s1 + $0x4c] ss:$16 sps:$4 sm:$0xff] (!%p238_p2)   ;;  %v318_v3 = vlaneseq (!%p238_p2) }
   0x9   : > { %512 = vmatprep.subr.bf16.mxu0 (!%p238_p2), %v1451_v5  ;;  %565 = vmatprep.subr.bf16.mxu1 (!%p238_p2), %v1453_v6  ;;  %v1461_v11 = vld [vmem:[%s1988_s1 + $0x40] ss:$16 sps:$4 sm:$0xff] (!%p238_p2)   ;;  %v1462_v12 = vld [vmem:[%s1988_s1 + $0x48] ss:$16 sps:$4 sm:$0xff] (!%p238_p2)   ;;  %v1463_v13 = vld [vmem:[%s1988_s1 + $0x64] ss:$16 sps:$4 sm:$0xff] (!%p238_p2)  }
   0xa   : > { %v1465_v14 = vld [vmem:[%s1988_s1 + $0x6c] ss:$16 sps:$4 sm:$0xff] (!%p238_p2)   ;;  %v1467_v15 = vld [vmem:[%s1988_s1 + $0x60] ss:$16 sps:$4 sm:$0xff] (!%p238_p2)   ;;  %v1468_v16 = vld [vmem:[%s1988_s1 + $0x68] ss:$16 sps:$4 sm:$0xff] (!%p238_p2)  }
   0xb   : > { %v1469_v17 = vld [vmem:[%s1988_s1 + $0x84] ss:$16 sps:$4 sm:$0xff] (!%p238_p2)   ;;  %v1471_v18 = vld [vmem:[%s1988_s1 + $0x8c] ss:$16 sps:$4 sm:$0xff] (!%p238_p2)   ;;  %v1473_v19 = vld [vmem:[%s1988_s1 + $0x80] ss:$16 sps:$4 sm:$0xff] (!%p238_p2)  }
   0xc   : > { %513 = vmatpush1.bf16.msra.mxu0 (!%p238_p2), %v1455_v7  ;;  %566 = vmatpush1.bf16.msra.mxu1 (!%p238_p2), %v1456_v8  ;;  %v1474_v20 = vld [vmem:[%s1988_s1 + $0x88] ss:$16 sps:$4 sm:$0xff] (!%p238_p2)   ;;  %v1475_v21 = vld [vmem:[%s1988_s1 + $0xa4] ss:$16 sps:$4 sm:$0xff] (!%p238_p2)   ;;  %v1477_v22 = vld [vmem:[%s1988_s1 + $0xac] ss:$16 sps:$4 sm:$0xff] (!%p238_p2)  }
   0xd   : > { %514 = vmatprep.subr.bf16.mxu0 %v1457_v9  ;;  %567 = vmatprep.subr.bf16.mxu1 %v1459_v10  ;;  %s1996_s25 = smov (!%p269_p3, %s1279_s25), 1  ;;  %v1479_v23 = vld [vmem:[%s1988_s1 + $0xa0] ss:$16 sps:$4 sm:$0xff]   ;;  %v1480_v24 = vld [vmem:[%s1988_s1 + $0xa8] ss:$16 sps:$4 sm:$0xff]   ;;  %v319_v4 = vshrl.u32 %v318_v3, 7 }
   0xe   : > { %s1363_s9 = sshll.u32 %s1996_s25, 4  ;;  %v1481_v25 = vld [vmem:[%s1988_s1 + $0xc4] ss:$16 sps:$4 sm:$0xff]   ;;  %v1483_v26 = vld [vmem:[%s1988_s1 + $0xcc] ss:$16 sps:$4 sm:$0xff]  }
   0xf   : > { %v1485_v27 = vld [vmem:[%s1988_s1 + $0xc0] ss:$16 sps:$4 sm:$0xff]   ;;  %v1486_v28 = vld [vmem:[%s1988_s1 + $0xc8] ss:$16 sps:$4 sm:$0xff]   ;;  %v1487_v29 = vld [vmem:[%s1988_s1 + $0xe4] ss:$16 sps:$4 sm:$0xff]   ;;  %s273_s26 = scalar_lea.vmem %s1987_s0, %s1363_s9  ;;  %s278_s23 = scalar_lea.vmem %s1994_s7, %s1363_s9 }
  0x10   : > { %515 = vmatpush1.bf16.msra.mxu0 %v1461_v11  ;;  %568 = vmatpush1.bf16.msra.mxu1 %v1462_v12  ;;  %v1489_v30 = vld [vmem:[%s1988_s1 + $0xec] ss:$16 sps:$4 sm:$0xff]   ;;  %v1491_v31 = vld [vmem:[%s1988_s1 + $0xe0] ss:$16 sps:$4 sm:$0xff]   ;;  %v1492_v32 = vld [vmem:[%s1988_s1 + $0xe8] ss:$16 sps:$4 sm:$0xff]  }
  0x11   : > { %516 = vmatprep.subr.bf16.mxu0 %v1463_v13  ;;  %569 = vmatprep.subr.bf16.mxu1 %v1465_v14  ;;  %v1736_v33 = vld [vmem:[%s273_s26] sm:$0xff]   ;;  %v1738_v34 = vld [vmem:[%s273_s26 + $0x8] sm:$0xff]   ;;  %v1503_v43 = vld [vmem:[%s1990_s3 + $0x50] sm:$0xff]   ;;  %v320_v5 = vsub.s32 0, %v319_v4  ;;  %v328_v6 = vsub.s32 2, %v319_v4  ;;  %v324_v8 = vsub.s32 1, %v319_v4 }
  0x12   : > { %v1495_v35 = vld [vmem:[%s1990_s3 + $0x40] sm:$0xff]   ;;  %v1499_v39 = vld [vmem:[%s1990_s3 + $0x48] sm:$0xff]   ;;  %v1504_v44 = vld [vmem:[%s1990_s3 + $0xd0] sm:$0xff]   ;;  %v332_v11 = vsub.s32 3, %v319_v4 }
  0x13   : > { %v1496_v36 = vld [vmem:[%s1990_s3 + $0xc0] sm:$0xff]   ;;  %v1500_v40 = vld [vmem:[%s1990_s3 + $0xc8] sm:$0xff]   ;;  %v1505_v45 = vld [vmem:[%s1990_s3 + $0x10] sm:$0xff]  }
  0x14   : > { %517 = vmatpush1.bf16.msra.mxu0 %v1467_v15  ;;  %570 = vmatpush1.bf16.msra.mxu1 %v1468_v16  ;;  %v1497_v37 = vld [vmem:[%s1990_s3] sm:$0xff]   ;;  %v1501_v41 = vld [vmem:[%s1990_s3 + $0x8] sm:$0xff]   ;;  %v1506_v46 = vld [vmem:[%s1990_s3 + $0x90] sm:$0xff]  }
  0x15   : > { %518 = vmatprep.subr.bf16.mxu0 %v1469_v17  ;;  %571 = vmatprep.subr.bf16.mxu1 %v1471_v18  ;;  %v1498_v38 = vld [vmem:[%s1990_s3 + $0x80] sm:$0xff]   ;;  %v1502_v42 = vld [vmem:[%s1990_s3 + $0x88] sm:$0xff]   ;;  %v1507_v47 = vld [vmem:[%s1990_s3 + $0x58] sm:$0xff]  }
  0x16   : > { %v1508_v48 = vld [vmem:[%s1990_s3 + $0xd8] sm:$0xff]   ;;  %v1511_v51 = vld [vmem:[%s1990_s3 + $0x60] sm:$0xff]   ;;  %v1515_v55 = vld [vmem:[%s1990_s3 + $0x68] sm:$0xff]  }
  0x17   : > { %v1509_v49 = vld [vmem:[%s1990_s3 + $0x18] sm:$0xff]   ;;  %v1512_v52 = vld [vmem:[%s1990_s3 + $0xe0] sm:$0xff]   ;;  %v1516_v56 = vld [vmem:[%s1990_s3 + $0xe8] sm:$0xff]  }
  0x18   : > { %519 = vmatpush1.bf16.msra.mxu0 %v1473_v19  ;;  %572 = vmatpush1.bf16.msra.mxu1 %v1474_v20  ;;  %v1510_v50 = vld [vmem:[%s1990_s3 + $0x98] sm:$0xff]   ;;  %v1513_v53 = vld [vmem:[%s1990_s3 + $0x20] sm:$0xff]   ;;  %v1517_v57 = vld [vmem:[%s1990_s3 + $0x28] sm:$0xff]  }
  0x19   : > { %520 = vmatprep.subr.bf16.mxu0 %v1475_v21  ;;  %573 = vmatprep.subr.bf16.mxu1 %v1477_v22  ;;  %v1514_v54 = vld [vmem:[%s1990_s3 + $0xa0] sm:$0xff]   ;;  %v1518_v58 = vld [vmem:[%s1990_s3 + $0xa8] sm:$0xff]   ;;  %v1519_v59 = vld [vmem:[%s1990_s3 + $0x70] sm:$0xff]  }
  0x1a   : > { %v1520_v60 = vld [vmem:[%s1990_s3 + $0xf0] sm:$0xff]   ;;  %v1523_v63 = vld [vmem:[%s1990_s3 + $0x78] sm:$0xff]   ;;  %v316_v7 = vld [vmem:[%s1989_s2] sm:$0xf] }
  0x1b   : > { %v1521_v61 = vld [vmem:[%s1990_s3 + $0x30] sm:$0xff]   ;;  %v1524_v0 = vld [vmem:[%s1990_s3 + $0xf8] sm:$0xff]   ;;  %v1845_v9 = vrot.slane %v316_v7, %v320_v5  ;;  %v1847_v10 = vrot.slane %v316_v7, %v328_v6  ;;  %v1849_v14 = vrot.slane %v316_v7, %v324_v8  ;;  %v1853_v19 = vrot.slane %v316_v7, %v332_v11 }
  0x1c   : > { %521 = vmatpush1.bf16.msra.mxu0 %v1479_v23  ;;  %574 = vmatpush1.bf16.msra.mxu1 %v1480_v24  ;;  %v1522_v62 = vld [vmem:[%s1990_s3 + $0xb0] sm:$0xff]   ;;  %v1525_v1 = vld [vmem:[%s1990_s3 + $0x38] sm:$0xff]  }
  0x1d   : > { %522 = vmatprep.subr.bf16.mxu0 %v1481_v25  ;;  %575 = vmatprep.subr.bf16.mxu1 %v1483_v26 }
  0x20   : > { %523 = vmatpush1.bf16.msra.mxu0 %v1485_v27  ;;  %576 = vmatpush1.bf16.msra.mxu1 %v1486_v28 }
  0x21   : > { %524 = vmatprep.subr.bf16.mxu0 %v1487_v29  ;;  %577 = vmatprep.subr.bf16.mxu1 %v1489_v30 }
  0x24   : > { %525 = vmatpush1.bf16.msra.mxu0 %v1491_v31  ;;  %578 = vmatpush1.bf16.msra.mxu1 %v1492_v32 }
  0x25   : > { %1380 = vmatprep.subr.bf16.mxu0 %v1495_v35  ;;  %1408 = vmatprep.subr.bf16.mxu1 %v1496_v36 }
  0x27   : > { %543 = vmatmul.mubr.bf16.vlgmr.msra.gmra.mrb[0].mxu0 %v1736_v33  ;;  %596 = vmatmul.mubr.bf16.vlgmr.msra.gmra.mrb[0].mxu1 %v1736_v33 }
  0x28   : > { %552 = vmatprep.mubr.bf16.mxu0 %v1577_v2  ;;  %605 = vmatprep.mubr.bf16.mxu1 %v1577_v2  ;;  %v1526_v2 = vld [vmem:[%s1990_s3 + $0xb8] sm:$0xff]  }
  0x29   : > { %1381 = vmatpush3.bf16.msra.mxu0 %v1497_v37  ;;  %1409 = vmatpush3.bf16.msra.mxu1 %v1498_v38 }
  0x2a   : > { %1382 = vmatprep.subr.bf16.mxu0 %v1499_v39  ;;  %1410 = vmatprep.subr.bf16.mxu1 %v1500_v40 }
  0x2d   : > { %1383 = vmatpush3.bf16.msra.mxu0 %v1501_v41  ;;  %1411 = vmatpush3.bf16.msra.mxu1 %v1502_v42 }
  0x2e   : > { %1384 = vmatprep.subr.bf16.mxu0 %v1503_v43  ;;  %1412 = vmatprep.subr.bf16.mxu1 %v1504_v44 }
  0x2f   : > { %553 = vmatmul.mubr.bf16.gmra.mrb[4].mxu0 %v1738_v34  ;;  %606 = vmatmul.mubr.bf16.gmra.mrb[4].mxu1 %v1738_v34 }
  0x31   : > { %1385 = vmatpush3.bf16.msra.mxu0 %v1505_v45  ;;  %1413 = vmatpush3.bf16.msra.mxu1 %v1506_v46 }
  0x32   : > { %1386 = vmatprep.subr.bf16.mxu0 %v1507_v47  ;;  %1414 = vmatprep.subr.bf16.mxu1 %v1508_v48 }
  0x35   : > { %1387 = vmatpush3.bf16.msra.mxu0 %v1509_v49  ;;  %1415 = vmatpush3.bf16.msra.mxu1 %v1510_v50 }
  0x36   : > { %1388 = vmatprep.subr.bf16.mxu0 %v1511_v51  ;;  %1416 = vmatprep.subr.bf16.mxu1 %v1512_v52 }
  0x39   : > { %1389 = vmatpush3.bf16.msra.mxu0 %v1513_v53  ;;  %1417 = vmatpush3.bf16.msra.mxu1 %v1514_v54 }
  0x3a   : > { %1390 = vmatprep.subr.bf16.mxu0 %v1515_v55  ;;  %1418 = vmatprep.subr.bf16.mxu1 %v1516_v56 }
  0x3d   : > { %1391 = vmatpush3.bf16.msra.mxu0 %v1517_v57  ;;  %1419 = vmatpush3.bf16.msra.mxu1 %v1518_v58 }
  0x3e   : > { %1392 = vmatprep.subr.bf16.mxu0 %v1519_v59  ;;  %1420 = vmatprep.subr.bf16.mxu1 %v1520_v60 }
  0x41   : > { %1393 = vmatpush3.bf16.msra.mxu0 %v1521_v61  ;;  %1421 = vmatpush3.bf16.msra.mxu1 %v1522_v62 }
  0x42   : > { %1394 = vmatprep.subr.bf16.mxu0 %v1523_v63  ;;  %1422 = vmatprep.subr.bf16.mxu1 %v1524_v0 }
  0x45   : > { %1395 = vmatpush3.bf16.msra.mxu0 %v1525_v1  ;;  %1423 = vmatpush3.bf16.msra.mxu1 %v1526_v2 }
  0xfa   : > { %v544_v12 = vpop.f32.mrb[0].mxu0  ;;  %v597_v13 = vpop.f32.mrb[0].mxu1 }
  0xfb   : > { %v545_v15 = vadd.f32 %v544_v12, %v1845_v9  ;;  %v598_v16 = vadd.f32 %v597_v13, %v1847_v10  ;;  %v546_v17 = vpop.f32.mrb[1].mxu0  ;;  %v599_v18 = vpop.f32.mrb[1].mxu1 }
  0xfc   : > { %v548_v20 = vpop.f32.mrb[2].mxu0  ;;  %v601_v21 = vpop.f32.mrb[2].mxu1  ;;  %v1856_v24 = vadd.f32 %v546_v17, %v1849_v14  ;;  %v1866_v32 = vadd.f32 %v599_v18, %v1853_v19 }
  0xfd   : > { %v632_v22 = vmul.f32 0.044715, %v545_v15  ;;  %v634_v23 = vmul.f32 0.044715, %v598_v16  ;;  %v549_v25 = vadd.f32 %v548_v20, %v1845_v9  ;;  %v1860_v26 = vadd.f32 %v601_v21, %v1847_v10  ;;  %v550_v27 = vpop.f32.mrb[3].mxu0  ;;  %v603_v28 = vpop.f32.mrb[3].mxu1 }
  0xfe   : > { %v1863_v31 = vadd.f32 %v550_v27, %v1849_v14  ;;  %v1869_v36 = vadd.f32 %v603_v28, %v1853_v19  ;;  %v1871_v37 = vmul.f32 0.5, %v545_v15  ;;  %v633_v41 = vmul.f32 0.044715, %v1856_v24 }
  0xff   : > { %v648_v29 = vmul.f32 %v632_v22, %v545_v15  ;;  %v650_v30 = vmul.f32 %v634_v23, %v598_v16  ;;  %v636_v35 = vmul.f32 0.044715, %v549_v25  ;;  %v638_v40 = vmul.f32 0.044715, %v1860_v26 }
 0x100   : > { %v637_v43 = vmul.f32 0.044715, %v1863_v31  ;;  %v1876_v47 = vmul.f32 0.5, %v598_v16  ;;  %v635_v52 = vmul.f32 0.044715, %v1866_v32  ;;  %v649_v63 = vmul.f32 %v633_v41, %v1856_v24 }
 0x101   : > { %v664_v38 = vmul.f32 %v648_v29, %v545_v15  ;;  %v666_v39 = vmul.f32 %v650_v30, %v598_v16  ;;  %v652_v42 = vmul.f32 %v636_v35, %v549_v25  ;;  %v654_v49 = vmul.f32 %v638_v40, %v1860_v26 }
 0x102   : > { %v554_v44 = vpop.f32.mrb[4].mxu0  ;;  %v607_v45 = vpop.f32.mrb[4].mxu1  ;;  %v639_v54 = vmul.f32 0.044715, %v1869_v36  ;;  %v653_v1 = vmul.f32 %v637_v43, %v1863_v31  ;;  %v651_v6 = vmul.f32 %v635_v52, %v1866_v32  ;;  %v620_v23 = vmul.f32 0.5, %v549_v25 }
 0x103   : > { %v680_v46 = vadd.f32 %v664_v38, %v545_v15  ;;  %v682_v48 = vadd.f32 %v666_v39, %v598_v16  ;;  %v556_v50 = vpop.f32.mrb[5].mxu0  ;;  %v609_v51 = vpop.f32.mrb[5].mxu1  ;;  %v668_v53 = vmul.f32 %v652_v42, %v549_v25  ;;  %v1882_v55 = vadd.f32 %v554_v44, %v1845_v9 }
 0x104   : > { %v558_v56 = vpop.f32.mrb[6].mxu0  ;;  %v611_v57 = vpop.f32.mrb[6].mxu1  ;;  %v670_v60 = vmul.f32 %v654_v49, %v1860_v26  ;;  %v1888_v2 = vadd.f32 %v607_v45, %v1847_v10  ;;  %v1893_v5 = vadd.f32 %v556_v50, %v1849_v14  ;;  %v655_v8 = vmul.f32 %v639_v54, %v1869_v36 }
 0x105   : > { %v696_v58 = vmul.f32 0.7978846, %v680_v46  ;;  %v698_v59 = vmul.f32 0.7978846, %v682_v48  ;;  %v560_v61 = vpop.f32.mrb[7].mxu0  ;;  %v613_v62 = vpop.f32.mrb[7].mxu1  ;;  %v684_v0 = vadd.f32 %v668_v53, %v549_v25  ;;  %v1899_v13 = vadd.f32 %v609_v51, %v1853_v19 }
 0x106   : > { %v686_v3 = vadd.f32 %v670_v60, %v1860_v26  ;;  %v640_v4 = vmul.f32 0.044715, %v1882_v55  ;;  %v641_v12 = vmul.f32 0.044715, %v1893_v5  ;;  %v1902_v15 = vadd.f32 %v558_v56, %v1845_v9 }
 0x107   : > { %1529 = vtanh.f32 %v696_v58  ;;  %v700_v7 = vmul.f32 0.7978846, %v684_v0  ;;  %v665_v16 = vmul.f32 %v649_v63, %v1856_v24  ;;  %v669_v17 = vmul.f32 %v653_v1, %v1863_v31 }
 0x108   : > { %1531 = vtanh.f32 %v698_v59  ;;  %v702_v11 = vmul.f32 0.7978846, %v686_v3  ;;  %v1907_v18 = vadd.f32 %v611_v57, %v1847_v10  ;;  %v656_v20 = vmul.f32 %v640_v4, %v1882_v55 }
 0x109   : > { %1533 = vtanh.f32 %v700_v7  ;;  %v642_v21 = vmul.f32 0.044715, %v1888_v2  ;;  %v643_v22 = vmul.f32 0.044715, %v1899_v13  ;;  %v657_v27 = vmul.f32 %v641_v12, %v1893_v5 }
 0x10a   : > { %1535 = vtanh.f32 %v702_v11  ;;  %v1914_v9 = vadd.f32 %v560_v61, %v1849_v14  ;;  %v1917_v28 = vadd.f32 %v613_v62, %v1853_v19  ;;  %v667_v29 = vmul.f32 %v651_v6, %v1866_v32 }
 0x10b   : > { %v671_v10 = vmul.f32 %v655_v8, %v1869_v36  ;;  %v644_v30 = vmul.f32 0.044715, %v1902_v15  ;;  %v646_v35 = vmul.f32 0.044715, %v1907_v18  ;;  %v659_v38 = vmul.f32 %v643_v22, %v1899_v13 }
 0x10c   : > { %v645_v25 = vmul.f32 0.044715, %v1914_v9  ;;  %v647_v39 = vmul.f32 0.044715, %v1917_v28  ;;  %v681_v14 = vadd.f32 %v665_v16, %v1856_v24  ;;  %v622_v40 = vmul.f32 0.5, %v1860_v26 }
 0x10d   : > { %v672_v19 = vmul.f32 %v656_v20, %v1882_v55  ;;  %v658_v41 = vmul.f32 %v642_v21, %v1888_v2  ;;  %v685_v42 = vadd.f32 %v669_v17, %v1863_v31  ;;  %v673_v43 = vmul.f32 %v657_v27, %v1893_v5 }
 0x10e   : > { %v661_v44 = vmul.f32 %v645_v25, %v1914_v9  ;;  %v663_v45 = vmul.f32 %v647_v39, %v1917_v28  ;;  %v697_v46 = vmul.f32 0.7978846, %v681_v14  ;;  %v660_v49 = vmul.f32 %v644_v30, %v1902_v15 }
 0x10f   : > { %v701_v50 = vmul.f32 0.7978846, %v685_v42  ;;  %v683_v51 = vadd.f32 %v667_v29, %v1866_v32  ;;  %v687_v26 = vadd.f32 %v671_v10, %v1869_v36  ;;  %v675_v53 = vmul.f32 %v659_v38, %v1899_v13 }
 0x110   : > { %v662_v54 = vmul.f32 %v646_v35, %v1907_v18  ;;  %v677_v56 = vmul.f32 %v661_v44, %v1914_v9  ;;  %1537 = vtanh.f32 %v697_v46  ;;  %v674_v61 = vmul.f32 %v658_v41, %v1888_v2 }
 0x111   : > { %v1530_v48 = vpop.eup %1529  ;;  %1539 = vtanh.f32 %v701_v50  ;;  %v699_v57 = vmul.f32 0.7978846, %v683_v51  ;;  %v703_v58 = vmul.f32 0.7978846, %v687_v26  ;;  %v679_v62 = vmul.f32 %v663_v45, %v1917_v28 }
 0x112   : > { %v1532_v52 = vpop.eup %1531  ;;  %v728_v59 = vadd.f32 1.0, %v1530_v48  ;;  %v689_v0 = vadd.f32 %v673_v43, %v1893_v5  ;;  %v676_v3 = vmul.f32 %v660_v49, %v1902_v15  ;;  %v693_v6 = vadd.f32 %v677_v56, %v1914_v9 }
 0x113   : > { %v1534_v60 = vpop.eup %1533  ;;  %v730_v63 = vadd.f32 1.0, %v1532_v52  ;;  %1541 = vtanh.f32 %v699_v57  ;;  %v678_v7 = vmul.f32 %v662_v54, %v1907_v18  ;;  %v691_v20 = vadd.f32 %v675_v53, %v1899_v13 }
 0x114   : > { %v1536_v1 = vpop.eup %1535  ;;  %v732_v4 = vadd.f32 1.0, %v1534_v60  ;;  %1543 = vtanh.f32 %v703_v58  ;;  %v705_v11 = vmul.f32 0.7978846, %v689_v0  ;;  %v744_v12 = vmul.f32 %v728_v59, %v1871_v37 }
 0x115   : > { %v734_v8 = vadd.f32 1.0, %v1536_v1  ;;  %v709_v17 = vmul.f32 0.7978846, %v693_v6  ;;  %v746_v21 = vmul.f32 %v730_v63, %v1876_v47  ;;  %v695_v27 = vadd.f32 %v679_v62, %v1917_v28 }
 0x116   : > { %v748_v16 = vmul.f32 %v732_v4, %v620_v23  ;;  %1545 = vtanh.f32 %v705_v11  ;;  %v707_v10 = vmul.f32 0.7978846, %v691_v20  ;;  %v688_v38 = vadd.f32 %v672_v19, %v1882_v55 }
 0x117   : > { %v750_v22 = vmul.f32 %v734_v8, %v622_v40  ;;  %1547 = vtanh.f32 %v709_v17  ;;  %v711_v35 = vmul.f32 0.7978846, %v695_v27  ;;  %v692_v25 = vadd.f32 %v676_v3, %v1902_v15 }
 0x118   : > { %v760_v29 = vpack.c.bf16 %v748_v16, %v744_v12  ;;  %1549 = vtanh.f32 %v707_v10  ;;  %v690_v37 = vadd.f32 %v674_v61, %v1888_v2  ;;  %v704_v39 = vmul.f32 0.7978846, %v688_v38 }
 0x119   : > { %v762_v30 = vpack.c.bf16 %v750_v22, %v746_v21  ;;  %1551 = vtanh.f32 %v711_v35  ;;  %v708_v47 = vmul.f32 0.7978846, %v692_v25  ;;  %v694_v14 = vadd.f32 %v678_v7, %v1907_v18 }
 0x11a   : > { %v1538_v23 = vpop.eup %1537  ;;  %v617_v41 = vmul.f32 0.5, %v1856_v24  ;;  %v706_v43 = vmul.f32 0.7978846, %v690_v37  ;;  %v621_v44 = vmul.f32 0.5, %v1863_v31  ;;  %1553 = vtanh.f32 %v704_v39 }
 0x11b   : > { %v1540_v40 = vpop.eup %1539  ;;  %v729_v42 = vadd.f32 1.0, %v1538_v23  ;;  %v710_v19 = vmul.f32 0.7978846, %v694_v14  ;;  %1555 = vtanh.f32 %v708_v47  ;;  %v619_v26 = vmul.f32 0.5, %v1866_v32 }
 0x11c   : > { %v733_v45 = vadd.f32 1.0, %v1540_v40  ;;  %1557 = vtanh.f32 %v706_v43  ;;  %v623_v52 = vmul.f32 0.5, %v1869_v36  ;;  %v625_v59 = vmul.f32 0.5, %v1893_v5 }
 0x11d   : > { %v1542_v46 = vpop.eup %1541  ;;  %v745_v49 = vmul.f32 %v729_v42, %v617_v41  ;;  %1559 = vtanh.f32 %v710_v19  ;;  %v629_v60 = vmul.f32 0.5, %v1914_v9  ;;  %v627_v3 = vmul.f32 0.5, %v1899_v13 }
 0x11e   : > { %v1544_v48 = vpop.eup %1543  ;;  %v749_v50 = vmul.f32 %v733_v45, %v621_v44  ;;  %v731_v51 = vadd.f32 1.0, %v1542_v46  ;;  %v631_v4 = vmul.f32 0.5, %v1917_v28  ;;  %v624_v17 = vmul.f32 0.5, %v1882_v55 }
 0x11f   : > { %v735_v53 = vadd.f32 1.0, %v1544_v48  ;;  %v628_v20 = vmul.f32 0.5, %v1902_v15  ;;  %v626_v13 = vmul.f32 0.5, %v1888_v2  ;;  %v1322_v15 = vld [vmem:[%s1991_s4] ss:$0 sm:$0xff]  ;;  %v1129_v45 = vunpack.c.l.bf16 %v1736_v33 }
 0x120   : > { %v1546_v24 = vpop.eup %1545  ;;  %v761_v54 = vpack.c.bf16 %v749_v50, %v745_v49  ;;  %v747_v31 = vmul.f32 %v731_v51, %v619_v26  ;;  %v1130_v26 = vunpack.c.h.bf16 %v1736_v33 }
 0x121   : > { %v1548_v56 = vpop.eup %1547  ;;  %v751_v57 = vmul.f32 %v735_v53, %v623_v52  ;;  %v737_v58 = vadd.f32 1.0, %v1546_v24 }
 0x122   : > { %1063 = vmatprep.mubr.bf16.mxu0 %v761_v54  ;;  %v741_v61 = vadd.f32 1.0, %v1548_v56  ;;  %v1550_v62 = vpop.eup %1549 }
 0x123   : > { %v763_v63 = vpack.c.bf16 %v751_v57, %v747_v31  ;;  %1064 = vmatmul.mubr.bf16.vlgmr.msra.gmra.mrb[8].mxu0 %v760_v29  ;;  %v1552_v32 = vpop.eup %1551  ;;  %v753_v0 = vmul.f32 %v737_v58, %v625_v59  ;;  %v739_v1 = vadd.f32 1.0, %v1550_v62 }
 0x124   : > { %v757_v36 = vmul.f32 %v741_v61, %v629_v60  ;;  %v743_v6 = vadd.f32 1.0, %v1552_v32  ;;  %v1554_v7 = vpop.eup %1553 }
 0x125   : > { %1112 = vmatprep.mubr.bf16.mxu1 %v763_v63  ;;  %v1556_v5 = vpop.eup %1555  ;;  %v755_v11 = vmul.f32 %v739_v1, %v627_v3  ;;  %v736_v12 = vadd.f32 1.0, %v1554_v7  ;;  %v1131_v63 = vunpack.c.l.bf16 %v1738_v34 }
 0x126   : > { %1113 = vmatmul.mubr.bf16.vlgmr.msra.gmra.mrb[8].mxu1 %v762_v30  ;;  %v765_v8 = vpack.c.bf16 %v757_v36, %v753_v0  ;;  %v759_v9 = vmul.f32 %v743_v6, %v631_v4  ;;  %v1558_v16 = vpop.eup %1557  ;;  %v740_v21 = vadd.f32 1.0, %v1556_v5  ;;  %v630_v30 = vmul.f32 0.5, %v1907_v18 }
 0x127   : > { %v1560_v22 = vpop.eup %1559  ;;  %v738_v28 = vadd.f32 1.0, %v1558_v16  ;;  %v752_v29 = vmul.f32 %v736_v12, %v624_v17  ;;  %v1132_v4 = vunpack.c.h.bf16 %v1738_v34 }
 0x128   : > { %1071 = vmatprep.mubr.bf16.mxu0 %v765_v8  ;;  %v767_v27 = vpack.c.bf16 %v759_v9, %v755_v11  ;;  %v756_v10 = vmul.f32 %v740_v21, %v628_v20  ;;  %v742_v35 = vadd.f32 1.0, %v1560_v22 }
 0x129   : > { %v754_v25 = vmul.f32 %v738_v28, %v626_v13 }
 0x12a   : > { %1120 = vmatprep.mubr.bf16.mxu1 %v767_v27  ;;  %v764_v38 = vpack.c.bf16 %v756_v10, %v752_v29  ;;  %v758_v37 = vmul.f32 %v742_v35, %v630_v30 }
 0x12c   : > { %1072 = vmatmul.mubr.bf16.gmra.mrb[12].mxu0 %v764_v38  ;;  %v766_v23 = vpack.c.bf16 %v758_v37, %v754_v25 }
 0x12e   : > { %1121 = vmatmul.mubr.bf16.gmra.mrb[12].mxu1 %v766_v23 }
 0x1f6   : > { %v1396_v55 = vpop.f32.mrb[8].mxu0 }
 0x1f7   : > { %v1397_v39 = vpop.f32.mrb[9].mxu0 }
 0x1f8   : > { %v1398_v2 = vadd.f32 %v1397_v39, %v1396_v55  ;;  %v1399_v47 = vpop.f32.mrb[10].mxu0 }
 0x1f9   : > { %v1424_v14 = vpop.f32.mrb[8].mxu1  ;;  %v1400_v40 = vpop.f32.mrb[11].mxu0 }
 0x1fa   : > { %v1066_v41 = vadd.f32 %v1398_v2, %v1322_v15  ;;  %v1425_v18 = vpop.f32.mrb[9].mxu1  ;;  %v1401_v42 = vadd.f32 %v1400_v40, %v1399_v47  ;;  %v1355_v40 = vld [vmem:[%s1992_s5] ss:$0 sm:$0xff] }
 0x1fb   : > { %v1426_v43 = vadd.f32 %v1425_v18, %v1424_v14  ;;  %v1427_v44 = vpop.f32.mrb[10].mxu1 }
 0x1fc   : > { %v1069_v19 = vadd.f32 %v1401_v42, %v1322_v15  ;;  %v1428_v46 = vpop.f32.mrb[11].mxu1 }
 0x1fd   : > { %v1115_v48 = vadd.f32 %v1426_v43, %v1066_v41  ;;  %v1429_v49 = vadd.f32 %v1428_v46, %v1427_v44  ;;  %v1356_v44 = vld [vmem:[%s1993_s6] ss:$0 sm:$0xff] }
 0x1ff   : > { %v1118_v50 = vadd.f32 %v1429_v49, %v1069_v19  ;;  %v1133_v51 = vadd.f32 %v1129_v45, %v1115_v48  ;;  %v1402_v52 = vpop.f32.mrb[12].mxu0 }
 0x200   : > { %v1403_v53 = vpop.f32.mrb[13].mxu0 }
 0x201   : > { %1139 = vadd.xlane.f32.xlu0 %v1133_v51  ;;  %v1430_v24 = vpop.f32.mrb[12].mxu1  ;;  %v1404_v54 = vadd.f32 %v1403_v53, %v1402_v52  ;;  %v1405_v56 = vpop.f32.mrb[14].mxu0  ;;  %v1134_v31 = vadd.f32 %v1130_v26, %v1118_v50 }
 0x202   : > { %v1431_v57 = vpop.f32.mrb[13].mxu1  ;;  %v1406_v58 = vpop.f32.mrb[15].mxu0 }
 0x203   : > { %v1074_v59 = vadd.f32 %v1404_v54, %v1322_v15  ;;  %v1432_v60 = vadd.f32 %v1431_v57, %v1430_v24  ;;  %v1433_v61 = vpop.f32.mrb[14].mxu1  ;;  %v1407_v62 = vadd.f32 %v1406_v58, %v1405_v56 }
 0x204   : > { %v1434_v32 = vpop.f32.mrb[15].mxu1 }
 0x205   : > { %1141 = vadd.xlane.f32.xlu0 %v1134_v31  ;;  %v1123_v0 = vadd.f32 %v1432_v60, %v1074_v59  ;;  %v1077_v36 = vadd.f32 %v1407_v62, %v1322_v15  ;;  %v1435_v33 = vadd.f32 %v1434_v32, %v1433_v61 }
 0x207   : > { %v1126_v1 = vadd.f32 %v1435_v33, %v1077_v36  ;;  %v1135_v3 = vadd.f32 %v1131_v63, %v1123_v0 }
 0x209   : > { %1143 = vadd.xlane.f32.xlu1 %v1135_v3  ;;  %v1136_v6 = vadd.f32 %v1132_v4, %v1126_v1 }
 0x20d   : > { %1145 = vadd.xlane.f32.xlu1 %v1136_v6 }
 0x28e   : > { %v1140_v7 = vpop.xlane.xlu0 %1139 }
 0x28f   : > { %v1148_v8 = vmul.f32 0.0078125, %v1140_v7 }
 0x291   : > { %v1152_v5 = vsub.f32 %v1133_v51, %v1148_v8 }
 0x292   : > { %v1142_v11 = vpop.xlane.xlu0 %1141 }
 0x293   : > { %v1149_v9 = vmul.f32 0.0078125, %v1142_v11  ;;  %v1156_v12 = vmul.f32 %v1152_v5, %v1152_v5 }
 0x295   : > { %v1153_v16 = vsub.f32 %v1134_v31, %v1149_v9  ;;  %1160 = vadd.xlane.f32.xlu0 %v1156_v12 }
 0x296   : > { %v1144_v20 = vpop.xlane.xlu1 %1143 }
 0x297   : > { %v1157_v17 = vmul.f32 %v1153_v16, %v1153_v16  ;;  %v1150_v21 = vmul.f32 0.0078125, %v1144_v20 }
 0x299   : > { %1162 = vadd.xlane.f32.xlu1 %v1157_v17  ;;  %v1154_v22 = vsub.f32 %v1135_v3, %v1150_v21 }
 0x29a   : > { %v1146_v27 = vpop.xlane.xlu1 %1145 }
 0x29b   : > { %v1151_v13 = vmul.f32 0.0078125, %v1146_v27  ;;  %v1158_v28 = vmul.f32 %v1154_v22, %v1154_v22 }
 0x29d   : > { %v1155_v34 = vsub.f32 %v1136_v6, %v1151_v13  ;;  %1164 = vadd.xlane.f32.xlu0 %v1158_v28 }
 0x29f   : > { %v1159_v29 = vmul.f32 %v1155_v34, %v1155_v34 }
 0x2a1   : > { %1166 = vadd.xlane.f32.xlu1 %v1159_v29 }
 0x322   : > { %v1161_v10 = vpop.xlane.xlu0 %1160 }
 0x323   : > { %v1168_v30 = vmul.f32 0.0078125, %v1161_v10 }
 0x325   : > { %v1172_v35 = vadd.f32 1e-12, %v1168_v30 }
 0x326   : > { %v1163_v38 = vpop.xlane.xlu1 %1162 }
 0x327   : > { %1561 = vrsqrt.f32 %v1172_v35  ;;  %v1169_v25 = vmul.f32 0.0078125, %v1163_v38 }
 0x329   : > { %v1173_v37 = vadd.f32 1e-12, %v1169_v25 }
 0x32a   : > { %v1165_v23 = vpop.xlane.xlu0 %1164 }
 0x32b   : > { %1563 = vrsqrt.f32 %v1173_v37  ;;  %v1170_v55 = vmul.f32 0.0078125, %v1165_v23 }
 0x32d   : > { %v1174_v15 = vadd.f32 1e-12, %v1170_v55 }
 0x32e   : > { %v1167_v39 = vpop.xlane.xlu1 %1166 }
 0x32f   : > { %1565 = vrsqrt.f32 %v1174_v15  ;;  %v1171_v47 = vmul.f32 0.0078125, %v1167_v39 }
 0x331   : > { %v1562_v2 = vpop.eup %1561  ;;  %v1175_v41 = vadd.f32 1e-12, %v1171_v47 }
 0x332   : > { %v1180_v14 = vmul.f32 %v1562_v2, %v1152_v5 }
 0x333   : > { %1567 = vrsqrt.f32 %v1175_v41 }
 0x334   : > { %v1190_v42 = vmul.f32 %v1355_v40, %v1180_v14 }
 0x335   : > { %v1564_v18 = vpop.eup %1563 }
 0x336   : > { %v1181_v43 = vmul.f32 %v1564_v18, %v1153_v16  ;;  %v1200_v19 = vadd.f32 %v1356_v44, %v1190_v42 }
 0x338   : > { %v1191_v45 = vmul.f32 %v1355_v40, %v1181_v43 }
 0x339   : > { %v1566_v48 = vpop.eup %1565 }
 0x33a   : > { %v1201_v46 = vadd.f32 %v1356_v44, %v1191_v45  ;;  %v1182_v50 = vmul.f32 %v1566_v48, %v1154_v22 }
 0x33c   : > { %v1372_v49 = vpack.c.bf16 %v1201_v46, %v1200_v19  ;;  %v1192_v26 = vmul.f32 %v1355_v40, %v1182_v50 }
 0x33d   : > { %v1568_v51 = vpop.eup %1567 }
 0x33e   : > { %1373 = vst [vmem:[%s278_s23] sm:$0xff] %v1372_v49   ;;  %v1183_v52 = vmul.f32 %v1568_v51, %v1155_v34  ;;  %v1202_v24 = vadd.f32 %v1356_v44, %v1192_v26 }
 0x340   : > { %v1193_v53 = vmul.f32 %v1355_v40, %v1183_v52 }
 0x342   : > { %v1203_v54 = vadd.f32 %v1356_v44, %v1193_v53 }
 0x344   : > { %v1377_v56 = vpack.c.bf16 %v1203_v54, %v1202_v24 }
 0x346   : > { %1379 = vst [vmem:[%s278_s23 + $0x8] sm:$0xff] %v1377_v56  }
 0x347 PF: > { %s17_s24 = sadd.s32 1, %s1575_s24  }
 0x348   : > { %p14_p4 = scmp.ge.s32.totalorder %s17_s24, 4  }
 0x34a   :  { %16 = sbr.rel (!%p14_p4) target bundleno = 1 (0x1), region = 78 }

</bundles_post_ra>
